<compile_context>
chip_gen: v6e
topology: v6e:2x2x1
jax: 0.10.0
libtpu: 0.0.40
codegen_flags: <defaults>
</compile_context>

<pallas_src>
import math
from functools import partial

import jax
import jax.numpy as jnp
from jax.experimental import pallas as pl
from jax.experimental.pallas import tpu as pltpu


def _magc_kernel(headers, shc, planes, eps,
                 x_ref, wpack_ref, w2pack_ref, spack_ref, o_ref):
    # x_ref block: (TB, C, HW) in the native activation dtype.
    nat = x_ref.dtype

    # ---- unpack the packed parameter slabs --------------------------------
    w1t = wpack_ref[:, :planes]                            # (C, planes)  = W1^T (f32)
    wm_col = wpack_ref[:, planes:planes + 1].astype(nat)   # (C, 1) per-channel mask weight
    w2t = w2pack_ref[:planes, :]                           # (planes, C) = W2^T
    b2 = w2pack_ref[planes:planes + 1, :]                  # (1, C)
    b1 = spack_ref[0:1, :]                                 # (1, planes)
    gamma = spack_ref[1:2, :]                              # (1, planes)
    beta = spack_ref[2:3, :]                               # (1, planes)
    bm = spack_ref[3:4, 0:1]                               # (1, 1)  (attn_scale folded in)

    # ---- per-header: mask logits -> softmax(spatial) -> context ------------
    # Processing one header at a time keeps temporaries at (TB, shc, HW)
    # (1/headers of the block) and keeps the slab multiplies in the input dtype.
    ctx_parts = []
    for h in range(headers):
        xh = x_ref[:, h * shc:(h + 1) * shc, :]            # (TB, shc, HW) native dtype
        wh = wm_col[h * shc:(h + 1) * shc, :]              # (shc, 1)      native dtype

        # conv_mask 1x1 (shc -> 1): multiply in native dtype, accumulate f32.
        logits = jnp.sum(xh * wh[None, :, :], axis=1, dtype=jnp.float32) + bm   # (TB, HW)

        # Exact softmax over the spatial axis (cheap; kernel is HBM-bound).
        m = jnp.max(logits, axis=-1, keepdims=True)
        e = jnp.exp(logits - m)
        p = e / jnp.sum(e, axis=-1, keepdims=True)          # (TB, HW) f32

        # context_h = sum_n x * p  -> (TB, shc), f32 accumulation.
        ctx_parts.append(
            jnp.sum(xh * p[:, None, :].astype(nat), axis=-1, dtype=jnp.float32))

    ctx = jnp.concatenate(ctx_parts, axis=1)                # (TB, C) f32

    # ---- transform: conv1x1 (C->planes) -> LayerNorm(planes) -> ReLU -> conv1x1 (planes->C)
    y1 = jnp.dot(ctx, w1t, preferred_element_type=jnp.float32) + b1     # (TB, planes)
    mu = jnp.mean(y1, axis=-1, keepdims=True)
    var = jnp.mean((y1 - mu) ** 2, axis=-1, keepdims=True)
    y1 = (y1 - mu) * jax.lax.rsqrt(var + eps)
    y1 = jnp.maximum(y1 * gamma + beta, 0.0)
    y2 = jnp.dot(y1, w2t, preferred_element_type=jnp.float32) + b2      # (TB, C)

    # ---- residual add, broadcast over spatial: single native-dtype pass ----
    o_ref[...] = x_ref[...] + y2.astype(o_ref.dtype)[:, :, None]


def _pick_batch_tile(B, C, HW, itemsize, *,
                     target_bytes=4 << 20, min_bytes=1 << 20, min_steps=8):
    """Batch-tile size balancing per-step overhead against pipeline depth.

    * ~1-4 MiB blocks sit on the measured ~85% HBM-roofline plateau.
    * Aim for >= ~8 grid steps (>= 4 per v7x TensorCore) so each core's
      BlockSpec pipeline reaches a steady state; a ragged final block is fine
      because every row (batch sample) is processed independently.
    * Never shrink a block below ~1 MiB just to add steps.
    """
    per_sample = max(1, C * HW * itemsize)
    tb_hi = max(1, target_bytes // per_sample)     # block <= ~4 MiB
    tb_lo = max(1, min_bytes // per_sample)        # block >= ~1 MiB (when B allows)
    tb_steps = max(1, B // min_steps)              # >= ~8 grid steps
    tb = min(tb_hi, max(tb_lo, tb_steps))
    return int(max(1, min(tb, B)))


def magc_forward(x_nchw, params, *, headers=8, attn_scale=False, eps=1e-5,
                 batch_tile=None, in_place=False):
    B, C, H, W = x_nchw.shape
    assert C % headers == 0
    shc = C // headers
    planes = params["w1"].shape[0]
    HW = H * W

    # No pad / no slice: the kernel block uses the full (C, HW) extents.
    x = x_nchw.reshape(B, C, HW)

    # ---- pack the tiny parameters into three small slabs -------------------
    scale = (1.0 / math.sqrt(shc)) if (attn_scale and headers > 1) else 1.0
    wm = params["wm"].reshape(shc).astype(jnp.float32) * scale
    bm = params["bm"].reshape(()).astype(jnp.float32) * scale
    wm_full = jnp.tile(wm, headers).reshape(C, 1)                      # per-channel mask weight

    w1t = params["w1"].reshape(planes, C).T.astype(jnp.float32)        # (C, planes)
    wpack = jnp.concatenate([w1t, wm_full], axis=1)                    # (C, planes + 1)

    w2t = params["w2"].reshape(C, planes).T.astype(jnp.float32)        # (planes, C)
    b2row = params["b2"].reshape(1, C).astype(jnp.float32)
    w2pack = jnp.concatenate([w2t, b2row], axis=0)                     # (planes + 1, C)

    spack = jnp.stack([
        params["b1"].reshape(planes).astype(jnp.float32),
        params["gamma"].reshape(planes).astype(jnp.float32),
        params["beta"].reshape(planes).astype(jnp.float32),
        jnp.full((planes,), bm, dtype=jnp.float32),
    ], axis=0)                                                         # (4, planes)

    TB = batch_tile if batch_tile is not None else _pick_batch_tile(
        B, C, HW, x.dtype.itemsize)
    TB = max(1, min(TB, B))
    grid = (pl.cdiv(B, TB),)                      # ragged final block allowed

    # Explicit scoped-VMEM budget: 2x in + 2x out pipeline buffers plus the
    # per-header temporaries, capped with headroom under v7x's 64 MiB VMEM.
    block_bytes = TB * C * HW * x.dtype.itemsize
    vmem_limit = int(min(48 << 20, max(32 << 20, 6 * block_bytes + (2 << 20))))

    kernel = partial(_magc_kernel, headers, shc, planes, eps)

    out = pl.pallas_call(
        kernel,
        out_shape=jax.ShapeDtypeStruct((B, C, HW), x.dtype),
        grid=grid,
        in_specs=[
            pl.BlockSpec((TB, C, HW), lambda b: (b, 0, 0)),
            pl.BlockSpec(wpack.shape, lambda b: (0, 0)),
            pl.BlockSpec(w2pack.shape, lambda b: (0, 0)),
            pl.BlockSpec(spack.shape, lambda b: (0, 0)),
        ],
        out_specs=pl.BlockSpec((TB, C, HW), lambda b: (b, 0, 0)),
        # Residual write-back in place is opt-in: it clobbers the caller's
        # activation buffer, which the surrounding model code must allow.
        input_output_aliases={0: 0} if in_place else {},
        compiler_params=pltpu.CompilerParams(
            dimension_semantics=("parallel",),
            vmem_limit_bytes=vmem_limit),
    )(x, wpack, w2pack, spack)

    return out.reshape(B, C, H, W)


def magc_reference(x, params, *, headers=8, attn_scale=False, eps=1e-5):
    """Plain-JAX reference matching the PyTorch MAGC.forward semantics."""
    B, C, H, W = x.shape
    shc = C // headers
    planes = params["w1"].shape[0]
    xh = x.reshape(B * headers, shc, H * W)
    logits = jnp.einsum("bcn,c->bn", xh, params["wm"].reshape(shc)) + params["bm"].reshape(())
    if attn_scale and headers > 1:
        logits = logits / math.sqrt(shc)
    p = jax.nn.softmax(logits, axis=1)
    context = (xh * p[:, None, :]).sum(-1).reshape(B, C)               # (B, C)
    y1 = context @ params["w1"].reshape(planes, C).T + params["b1"].reshape(planes)
    mu = y1.mean(axis=-1, keepdims=True)
    var = ((y1 - mu) ** 2).mean(axis=-1, keepdims=True)
    y1 = (y1 - mu) / jnp.sqrt(var + eps)
    y1 = y1 * params["gamma"].reshape(planes) + params["beta"].reshape(planes)
    y1 = jnp.maximum(y1, 0.0)
    y2 = y1 @ params["w2"].reshape(C, planes).T + params["b2"].reshape(C)
    return x + y2[:, :, None, None]


def _make_params(key, C, headers, ratio):
    shc = C // headers
    planes = int(C * ratio)
    ks = jax.random.split(key, 9)
    return {
        # conv_mask: Conv2d(shc, 1, 1)  -> weight (1, shc, 1, 1), bias (1,)
        "wm":    0.2 * jax.random.normal(ks[0], (shc,), jnp.float32),
        "bm":    0.1 * jax.random.normal(ks[1], (1,), jnp.float32),
        # transform[0]: Conv2d(C, planes, 1)
        "w1":    0.2 * jax.random.normal(ks[2], (planes, C), jnp.float32),
        "b1":    0.1 * jax.random.normal(ks[3], (planes,), jnp.float32),
        # transform[1]: LayerNorm([planes, 1, 1])
        "gamma": 1.0 + 0.1 * jax.random.normal(ks[4], (planes,), jnp.float32),
        "beta":  0.1 * jax.random.normal(ks[5], (planes,), jnp.float32),
        # transform[3]: Conv2d(planes, C, 1)
        "w2":    0.2 * jax.random.normal(ks[6], (C, planes), jnp.float32),
        "b2":    0.1 * jax.random.normal(ks[7], (C,), jnp.float32),
    }


if __name__ == "__main__":
    # Shapes consistent with MAGC(inplanes=64, headers=8, ratio=0.0625):
    #   single_header_inplanes = 8, planes = 4
    headers = 8
    ratio = 0.0625
    attn_scale = True            # exercise the folded 1/sqrt(shc) scaling path

    key = jax.random.PRNGKey(0)
    kp, kx1, kx2 = jax.random.split(key, 3)
    C = 64
    params = _make_params(kp, C, headers, ratio)

    # --- check 1: 128-aligned spatial size (lane-dense stores) -------------
    B, H, W = 2, 16, 16
    x = jax.random.normal(kx1, (B, C, H, W), dtype=jnp.float32)
    ref = magc_reference(x, params, headers=headers, attn_scale=attn_scale)
    out = jax.block_until_ready(
        magc_forward(x, params, headers=headers, attn_scale=attn_scale))
    err1 = float(jnp.max(jnp.abs(out - ref)))
    assert out.shape == (B, C, H, W)
    assert err1 < 1e-3, f"max abs error (aligned) {err1}"

    # --- check 2: non-128-aligned spatial size + ragged batch tiling -------
    B2, H2, W2 = 3, 14, 14       # HW = 196 (not a multiple of 128), TB=2 -> ragged grid
    x2 = jax.random.normal(kx2, (B2, C, H2, W2), dtype=jnp.float32)
    ref2 = magc_reference(x2, params, headers=headers, attn_scale=attn_scale)
    out2 = jax.block_until_ready(
        magc_forward(x2, params, headers=headers, attn_scale=attn_scale, batch_tile=2))
    err2 = float(jnp.max(jnp.abs(out2 - ref2)))
    assert out2.shape == (B2, C, H2, W2)
    assert err2 < 1e-3, f"max abs error (ragged) {err2}"

    print("KERNEL_OK")
</pallas_src>

<mosaic_0001>
module attributes {stable_mosaic.version = 11 : i64} {
  func.func @_magc_kernel(%arg0: i32, %arg1: memref<2x64x256xf32, #tpu.memory_space<vmem>>, %arg2: memref<64x5xf32, #tpu.memory_space<vmem>>, %arg3: memref<5x64xf32, #tpu.memory_space<vmem>>, %arg4: memref<4x4xf32, #tpu.memory_space<vmem>>, %arg5: memref<2x64x256xf32, #tpu.memory_space<vmem>>) attributes {dimension_semantics = [#tpu.dimension_semantics<parallel>], iteration_bounds = array<i64: 1>, scalar_prefetch = 0 : i64, scratch_operands = 0 : i64, tpu.core_type = #tpu.core_type<tc>, window_params = [{transform_indices = @transform_0, window_bounds = array<i64: 2, 64, 256>}, {pipeline_mode = #tpu.pipeline_mode<synchronous>, transform_indices = @transform_1, window_bounds = array<i64: 64, 5>}, {pipeline_mode = #tpu.pipeline_mode<synchronous>, transform_indices = @transform_2, window_bounds = array<i64: 5, 64>}, {pipeline_mode = #tpu.pipeline_mode<synchronous>, transform_indices = @transform_3, window_bounds = array<i64: 4, 4>}, {transform_indices = @transform_4, window_bounds = array<i64: 2, 64, 256>}]} {
    %c0 = arith.constant 0 : index
    %c0_0 = arith.constant 0 : index
    %0 = vector.load %arg2[%c0, %c0_0] : memref<64x5xf32, #tpu.memory_space<vmem>>, vector<64x4xf32>
    %c0_1 = arith.constant 0 : index
    %c4 = arith.constant 4 : index
    %1 = vector.load %arg2[%c0_1, %c4] : memref<64x5xf32, #tpu.memory_space<vmem>>, vector<64x1xf32>
    %c0_2 = arith.constant 0 : index
    %c0_3 = arith.constant 0 : index
    %2 = vector.load %arg3[%c0_2, %c0_3] : memref<5x64xf32, #tpu.memory_space<vmem>>, vector<4x64xf32>
    %c4_4 = arith.constant 4 : index
    %c0_5 = arith.constant 0 : index
    %3 = vector.load %arg3[%c4_4, %c0_5] : memref<5x64xf32, #tpu.memory_space<vmem>>, vector<1x64xf32>
    %c0_6 = arith.constant 0 : index
    %c0_7 = arith.constant 0 : index
    %4 = vector.load %arg4[%c0_6, %c0_7] : memref<4x4xf32, #tpu.memory_space<vmem>>, vector<1x4xf32>
    %c1 = arith.constant 1 : index
    %c0_8 = arith.constant 0 : index
    %5 = vector.load %arg4[%c1, %c0_8] : memref<4x4xf32, #tpu.memory_space<vmem>>, vector<1x4xf32>
    %c2 = arith.constant 2 : index
    %c0_9 = arith.constant 0 : index
    %6 = vector.load %arg4[%c2, %c0_9] : memref<4x4xf32, #tpu.memory_space<vmem>>, vector<1x4xf32>
    %c3 = arith.constant 3 : index
    %c0_10 = arith.constant 0 : index
    %7 = vector.load %arg4[%c3, %c0_10] : memref<4x4xf32, #tpu.memory_space<vmem>>, vector<1x1xf32>
    %c0_11 = arith.constant 0 : index
    %c0_12 = arith.constant 0 : index
    %c0_13 = arith.constant 0 : index
    %8 = vector.load %arg1[%c0_11, %c0_12, %c0_13] : memref<2x64x256xf32, #tpu.memory_space<vmem>>, vector<2x8x256xf32>
    %9 = vector.extract_strided_slice %1 {offsets = [0, 0], sizes = [8, 1], strides = [1, 1]} : vector<64x1xf32> to vector<8x1xf32>
    %10 = vector.shape_cast %9 : vector<8x1xf32> to vector<1x8x1xf32>
    %11 = vector.broadcast %10 : vector<1x8x1xf32> to vector<2x8x256xf32>
    %12 = arith.mulf %8, %11 : vector<2x8x256xf32>
    %cst = arith.constant dense<0.000000e+00> : vector<2x256xf32>
    %13 = vector.multi_reduction <add>, %12, %cst [1] : vector<2x8x256xf32> to vector<2x256xf32>
    %14 = vector.broadcast %7 : vector<1x1xf32> to vector<2x256xf32>
    %15 = arith.addf %13, %14 : vector<2x256xf32>
    %cst_14 = arith.constant dense<0xFF800000> : vector<2xf32>
    %16 = vector.multi_reduction <maximumf>, %15, %cst_14 [1] : vector<2x256xf32> to vector<2xf32>
    %17 = vector.shape_cast %16 : vector<2xf32> to vector<2x1xf32>
    %18 = vector.broadcast %17 : vector<2x1xf32> to vector<2x256xf32>
    %19 = arith.subf %15, %18 : vector<2x256xf32>
    %20 = math.exp %19 : vector<2x256xf32>
    %cst_15 = arith.constant dense<0.000000e+00> : vector<2xf32>
    %21 = vector.multi_reduction <add>, %20, %cst_15 [1] : vector<2x256xf32> to vector<2xf32>
    %22 = vector.shape_cast %21 : vector<2xf32> to vector<2x1xf32>
    %23 = vector.broadcast %22 : vector<2x1xf32> to vector<2x256xf32>
    %24 = arith.divf %20, %23 : vector<2x256xf32>
    %25 = vector.shape_cast %24 : vector<2x256xf32> to vector<2x1x256xf32>
    %26 = vector.broadcast %25 : vector<2x1x256xf32> to vector<2x8x256xf32>
    %27 = arith.mulf %8, %26 : vector<2x8x256xf32>
    %cst_16 = arith.constant dense<0.000000e+00> : vector<2x8xf32>
    %28 = vector.multi_reduction <add>, %27, %cst_16 [2] : vector<2x8x256xf32> to vector<2x8xf32>
    %c0_17 = arith.constant 0 : index
    %c8 = arith.constant 8 : index
    %c0_18 = arith.constant 0 : index
    %29 = vector.load %arg1[%c0_17, %c8, %c0_18] : memref<2x64x256xf32, #tpu.memory_space<vmem>>, vector<2x8x256xf32>
    %30 = vector.extract_strided_slice %1 {offsets = [8, 0], sizes = [8, 1], strides = [1, 1]} : vector<64x1xf32> to vector<8x1xf32>
    %31 = vector.shape_cast %30 : vector<8x1xf32> to vector<1x8x1xf32>
    %32 = vector.broadcast %31 : vector<1x8x1xf32> to vector<2x8x256xf32>
    %33 = arith.mulf %29, %32 : vector<2x8x256xf32>
    %cst_19 = arith.constant dense<0.000000e+00> : vector<2x256xf32>
    %34 = vector.multi_reduction <add>, %33, %cst_19 [1] : vector<2x8x256xf32> to vector<2x256xf32>
    %35 = vector.broadcast %7 : vector<1x1xf32> to vector<2x256xf32>
    %36 = arith.addf %34, %35 : vector<2x256xf32>
    %cst_20 = arith.constant dense<0xFF800000> : vector<2xf32>
    %37 = vector.multi_reduction <maximumf>, %36, %cst_20 [1] : vector<2x256xf32> to vector<2xf32>
    %38 = vector.shape_cast %37 : vector<2xf32> to vector<2x1xf32>
    %39 = vector.broadcast %38 : vector<2x1xf32> to vector<2x256xf32>
    %40 = arith.subf %36, %39 : vector<2x256xf32>
    %41 = math.exp %40 : vector<2x256xf32>
    %cst_21 = arith.constant dense<0.000000e+00> : vector<2xf32>
    %42 = vector.multi_reduction <add>, %41, %cst_21 [1] : vector<2x256xf32> to vector<2xf32>
    %43 = vector.shape_cast %42 : vector<2xf32> to vector<2x1xf32>
    %44 = vector.broadcast %43 : vector<2x1xf32> to vector<2x256xf32>
    %45 = arith.divf %41, %44 : vector<2x256xf32>
    %46 = vector.shape_cast %45 : vector<2x256xf32> to vector<2x1x256xf32>
    %47 = vector.broadcast %46 : vector<2x1x256xf32> to vector<2x8x256xf32>
    %48 = arith.mulf %29, %47 : vector<2x8x256xf32>
    %cst_22 = arith.constant dense<0.000000e+00> : vector<2x8xf32>
    %49 = vector.multi_reduction <add>, %48, %cst_22 [2] : vector<2x8x256xf32> to vector<2x8xf32>
    %c0_23 = arith.constant 0 : index
    %c16 = arith.constant 16 : index
    %c0_24 = arith.constant 0 : index
    %50 = vector.load %arg1[%c0_23, %c16, %c0_24] : memref<2x64x256xf32, #tpu.memory_space<vmem>>, vector<2x8x256xf32>
    %51 = vector.extract_strided_slice %1 {offsets = [16, 0], sizes = [8, 1], strides = [1, 1]} : vector<64x1xf32> to vector<8x1xf32>
    %52 = vector.shape_cast %51 : vector<8x1xf32> to vector<1x8x1xf32>
    %53 = vector.broadcast %52 : vector<1x8x1xf32> to vector<2x8x256xf32>
    %54 = arith.mulf %50, %53 : vector<2x8x256xf32>
    %cst_25 = arith.constant dense<0.000000e+00> : vector<2x256xf32>
    %55 = vector.multi_reduction <add>, %54, %cst_25 [1] : vector<2x8x256xf32> to vector<2x256xf32>
    %56 = vector.broadcast %7 : vector<1x1xf32> to vector<2x256xf32>
    %57 = arith.addf %55, %56 : vector<2x256xf32>
    %cst_26 = arith.constant dense<0xFF800000> : vector<2xf32>
    %58 = vector.multi_reduction <maximumf>, %57, %cst_26 [1] : vector<2x256xf32> to vector<2xf32>
    %59 = vector.shape_cast %58 : vector<2xf32> to vector<2x1xf32>
    %60 = vector.broadcast %59 : vector<2x1xf32> to vector<2x256xf32>
    %61 = arith.subf %57, %60 : vector<2x256xf32>
    %62 = math.exp %61 : vector<2x256xf32>
    %cst_27 = arith.constant dense<0.000000e+00> : vector<2xf32>
    %63 = vector.multi_reduction <add>, %62, %cst_27 [1] : vector<2x256xf32> to vector<2xf32>
    %64 = vector.shape_cast %63 : vector<2xf32> to vector<2x1xf32>
    %65 = vector.broadcast %64 : vector<2x1xf32> to vector<2x256xf32>
    %66 = arith.divf %62, %65 : vector<2x256xf32>
    %67 = vector.shape_cast %66 : vector<2x256xf32> to vector<2x1x256xf32>
    %68 = vector.broadcast %67 : vector<2x1x256xf32> to vector<2x8x256xf32>
    %69 = arith.mulf %50, %68 : vector<2x8x256xf32>
    %cst_28 = arith.constant dense<0.000000e+00> : vector<2x8xf32>
    %70 = vector.multi_reduction <add>, %69, %cst_28 [2] : vector<2x8x256xf32> to vector<2x8xf32>
    %c0_29 = arith.constant 0 : index
    %c24 = arith.constant 24 : index
    %c0_30 = arith.constant 0 : index
    %71 = vector.load %arg1[%c0_29, %c24, %c0_30] : memref<2x64x256xf32, #tpu.memory_space<vmem>>, vector<2x8x256xf32>
    %72 = vector.extract_strided_slice %1 {offsets = [24, 0], sizes = [8, 1], strides = [1, 1]} : vector<64x1xf32> to vector<8x1xf32>
    %73 = vector.shape_cast %72 : vector<8x1xf32> to vector<1x8x1xf32>
    %74 = vector.broadcast %73 : vector<1x8x1xf32> to vector<2x8x256xf32>
    %75 = arith.mulf %71, %74 : vector<2x8x256xf32>
    %cst_31 = arith.constant dense<0.000000e+00> : vector<2x256xf32>
    %76 = vector.multi_reduction <add>, %75, %cst_31 [1] : vector<2x8x256xf32> to vector<2x256xf32>
    %77 = vector.broadcast %7 : vector<1x1xf32> to vector<2x256xf32>
    %78 = arith.addf %76, %77 : vector<2x256xf32>
    %cst_32 = arith.constant dense<0xFF800000> : vector<2xf32>
    %79 = vector.multi_reduction <maximumf>, %78, %cst_32 [1] : vector<2x256xf32> to vector<2xf32>
    %80 = vector.shape_cast %79 : vector<2xf32> to vector<2x1xf32>
    %81 = vector.broadcast %80 : vector<2x1xf32> to vector<2x256xf32>
    %82 = arith.subf %78, %81 : vector<2x256xf32>
    %83 = math.exp %82 : vector<2x256xf32>
    %cst_33 = arith.constant dense<0.000000e+00> : vector<2xf32>
    %84 = vector.multi_reduction <add>, %83, %cst_33 [1] : vector<2x256xf32> to vector<2xf32>
    %85 = vector.shape_cast %84 : vector<2xf32> to vector<2x1xf32>
    %86 = vector.broadcast %85 : vector<2x1xf32> to vector<2x256xf32>
    %87 = arith.divf %83, %86 : vector<2x256xf32>
    %88 = vector.shape_cast %87 : vector<2x256xf32> to vector<2x1x256xf32>
    %89 = vector.broadcast %88 : vector<2x1x256xf32> to vector<2x8x256xf32>
    %90 = arith.mulf %71, %89 : vector<2x8x256xf32>
    %cst_34 = arith.constant dense<0.000000e+00> : vector<2x8xf32>
    %91 = vector.multi_reduction <add>, %90, %cst_34 [2] : vector<2x8x256xf32> to vector<2x8xf32>
    %c0_35 = arith.constant 0 : index
    %c32 = arith.constant 32 : index
    %c0_36 = arith.constant 0 : index
    %92 = vector.load %arg1[%c0_35, %c32, %c0_36] : memref<2x64x256xf32, #tpu.memory_space<vmem>>, vector<2x8x256xf32>
    %93 = vector.extract_strided_slice %1 {offsets = [32, 0], sizes = [8, 1], strides = [1, 1]} : vector<64x1xf32> to vector<8x1xf32>
    %94 = vector.shape_cast %93 : vector<8x1xf32> to vector<1x8x1xf32>
    %95 = vector.broadcast %94 : vector<1x8x1xf32> to vector<2x8x256xf32>
    %96 = arith.mulf %92, %95 : vector<2x8x256xf32>
    %cst_37 = arith.constant dense<0.000000e+00> : vector<2x256xf32>
    %97 = vector.multi_reduction <add>, %96, %cst_37 [1] : vector<2x8x256xf32> to vector<2x256xf32>
    %98 = vector.broadcast %7 : vector<1x1xf32> to vector<2x256xf32>
    %99 = arith.addf %97, %98 : vector<2x256xf32>
    %cst_38 = arith.constant dense<0xFF800000> : vector<2xf32>
    %100 = vector.multi_reduction <maximumf>, %99, %cst_38 [1] : vector<2x256xf32> to vector<2xf32>
    %101 = vector.shape_cast %100 : vector<2xf32> to vector<2x1xf32>
    %102 = vector.broadcast %101 : vector<2x1xf32> to vector<2x256xf32>
    %103 = arith.subf %99, %102 : vector<2x256xf32>
    %104 = math.exp %103 : vector<2x256xf32>
    %cst_39 = arith.constant dense<0.000000e+00> : vector<2xf32>
    %105 = vector.multi_reduction <add>, %104, %cst_39 [1] : vector<2x256xf32> to vector<2xf32>
    %106 = vector.shape_cast %105 : vector<2xf32> to vector<2x1xf32>
    %107 = vector.broadcast %106 : vector<2x1xf32> to vector<2x256xf32>
    %108 = arith.divf %104, %107 : vector<2x256xf32>
    %109 = vector.shape_cast %108 : vector<2x256xf32> to vector<2x1x256xf32>
    %110 = vector.broadcast %109 : vector<2x1x256xf32> to vector<2x8x256xf32>
    %111 = arith.mulf %92, %110 : vector<2x8x256xf32>
    %cst_40 = arith.constant dense<0.000000e+00> : vector<2x8xf32>
    %112 = vector.multi_reduction <add>, %111, %cst_40 [2] : vector<2x8x256xf32> to vector<2x8xf32>
    %c0_41 = arith.constant 0 : index
    %c40 = arith.constant 40 : index
    %c0_42 = arith.constant 0 : index
    %113 = vector.load %arg1[%c0_41, %c40, %c0_42] : memref<2x64x256xf32, #tpu.memory_space<vmem>>, vector<2x8x256xf32>
    %114 = vector.extract_strided_slice %1 {offsets = [40, 0], sizes = [8, 1], strides = [1, 1]} : vector<64x1xf32> to vector<8x1xf32>
    %115 = vector.shape_cast %114 : vector<8x1xf32> to vector<1x8x1xf32>
    %116 = vector.broadcast %115 : vector<1x8x1xf32> to vector<2x8x256xf32>
    %117 = arith.mulf %113, %116 : vector<2x8x256xf32>
    %cst_43 = arith.constant dense<0.000000e+00> : vector<2x256xf32>
    %118 = vector.multi_reduction <add>, %117, %cst_43 [1] : vector<2x8x256xf32> to vector<2x256xf32>
    %119 = vector.broadcast %7 : vector<1x1xf32> to vector<2x256xf32>
    %120 = arith.addf %118, %119 : vector<2x256xf32>
    %cst_44 = arith.constant dense<0xFF800000> : vector<2xf32>
    %121 = vector.multi_reduction <maximumf>, %120, %cst_44 [1] : vector<2x256xf32> to vector<2xf32>
    %122 = vector.shape_cast %121 : vector<2xf32> to vector<2x1xf32>
    %123 = vector.broadcast %122 : vector<2x1xf32> to vector<2x256xf32>
    %124 = arith.subf %120, %123 : vector<2x256xf32>
    %125 = math.exp %124 : vector<2x256xf32>
    %cst_45 = arith.constant dense<0.000000e+00> : vector<2xf32>
    %126 = vector.multi_reduction <add>, %125, %cst_45 [1] : vector<2x256xf32> to vector<2xf32>
    %127 = vector.shape_cast %126 : vector<2xf32> to vector<2x1xf32>
    %128 = vector.broadcast %127 : vector<2x1xf32> to vector<2x256xf32>
    %129 = arith.divf %125, %128 : vector<2x256xf32>
    %130 = vector.shape_cast %129 : vector<2x256xf32> to vector<2x1x256xf32>
    %131 = vector.broadcast %130 : vector<2x1x256xf32> to vector<2x8x256xf32>
    %132 = arith.mulf %113, %131 : vector<2x8x256xf32>
    %cst_46 = arith.constant dense<0.000000e+00> : vector<2x8xf32>
    %133 = vector.multi_reduction <add>, %132, %cst_46 [2] : vector<2x8x256xf32> to vector<2x8xf32>
    %c0_47 = arith.constant 0 : index
    %c48 = arith.constant 48 : index
    %c0_48 = arith.constant 0 : index
    %134 = vector.load %arg1[%c0_47, %c48, %c0_48] : memref<2x64x256xf32, #tpu.memory_space<vmem>>, vector<2x8x256xf32>
    %135 = vector.extract_strided_slice %1 {offsets = [48, 0], sizes = [8, 1], strides = [1, 1]} : vector<64x1xf32> to vector<8x1xf32>
    %136 = vector.shape_cast %135 : vector<8x1xf32> to vector<1x8x1xf32>
    %137 = vector.broadcast %136 : vector<1x8x1xf32> to vector<2x8x256xf32>
    %138 = arith.mulf %134, %137 : vector<2x8x256xf32>
    %cst_49 = arith.constant dense<0.000000e+00> : vector<2x256xf32>
    %139 = vector.multi_reduction <add>, %138, %cst_49 [1] : vector<2x8x256xf32> to vector<2x256xf32>
    %140 = vector.broadcast %7 : vector<1x1xf32> to vector<2x256xf32>
    %141 = arith.addf %139, %140 : vector<2x256xf32>
    %cst_50 = arith.constant dense<0xFF800000> : vector<2xf32>
    %142 = vector.multi_reduction <maximumf>, %141, %cst_50 [1] : vector<2x256xf32> to vector<2xf32>
    %143 = vector.shape_cast %142 : vector<2xf32> to vector<2x1xf32>
    %144 = vector.broadcast %143 : vector<2x1xf32> to vector<2x256xf32>
    %145 = arith.subf %141, %144 : vector<2x256xf32>
    %146 = math.exp %145 : vector<2x256xf32>
    %cst_51 = arith.constant dense<0.000000e+00> : vector<2xf32>
    %147 = vector.multi_reduction <add>, %146, %cst_51 [1] : vector<2x256xf32> to vector<2xf32>
    %148 = vector.shape_cast %147 : vector<2xf32> to vector<2x1xf32>
    %149 = vector.broadcast %148 : vector<2x1xf32> to vector<2x256xf32>
    %150 = arith.divf %146, %149 : vector<2x256xf32>
    %151 = vector.shape_cast %150 : vector<2x256xf32> to vector<2x1x256xf32>
    %152 = vector.broadcast %151 : vector<2x1x256xf32> to vector<2x8x256xf32>
    %153 = arith.mulf %134, %152 : vector<2x8x256xf32>
    %cst_52 = arith.constant dense<0.000000e+00> : vector<2x8xf32>
    %154 = vector.multi_reduction <add>, %153, %cst_52 [2] : vector<2x8x256xf32> to vector<2x8xf32>
    %c0_53 = arith.constant 0 : index
    %c56 = arith.constant 56 : index
    %c0_54 = arith.constant 0 : index
    %155 = vector.load %arg1[%c0_53, %c56, %c0_54] : memref<2x64x256xf32, #tpu.memory_space<vmem>>, vector<2x8x256xf32>
    %156 = vector.extract_strided_slice %1 {offsets = [56, 0], sizes = [8, 1], strides = [1, 1]} : vector<64x1xf32> to vector<8x1xf32>
    %157 = vector.shape_cast %156 : vector<8x1xf32> to vector<1x8x1xf32>
    %158 = vector.broadcast %157 : vector<1x8x1xf32> to vector<2x8x256xf32>
    %159 = arith.mulf %155, %158 : vector<2x8x256xf32>
    %cst_55 = arith.constant dense<0.000000e+00> : vector<2x256xf32>
    %160 = vector.multi_reduction <add>, %159, %cst_55 [1] : vector<2x8x256xf32> to vector<2x256xf32>
    %161 = vector.broadcast %7 : vector<1x1xf32> to vector<2x256xf32>
    %162 = arith.addf %160, %161 : vector<2x256xf32>
    %cst_56 = arith.constant dense<0xFF800000> : vector<2xf32>
    %163 = vector.multi_reduction <maximumf>, %162, %cst_56 [1] : vector<2x256xf32> to vector<2xf32>
    %164 = vector.shape_cast %163 : vector<2xf32> to vector<2x1xf32>
    %165 = vector.broadcast %164 : vector<2x1xf32> to vector<2x256xf32>
    %166 = arith.subf %162, %165 : vector<2x256xf32>
    %167 = math.exp %166 : vector<2x256xf32>
    %cst_57 = arith.constant dense<0.000000e+00> : vector<2xf32>
    %168 = vector.multi_reduction <add>, %167, %cst_57 [1] : vector<2x256xf32> to vector<2xf32>
    %169 = vector.shape_cast %168 : vector<2xf32> to vector<2x1xf32>
    %170 = vector.broadcast %169 : vector<2x1xf32> to vector<2x256xf32>
    %171 = arith.divf %167, %170 : vector<2x256xf32>
    %172 = vector.shape_cast %171 : vector<2x256xf32> to vector<2x1x256xf32>
    %173 = vector.broadcast %172 : vector<2x1x256xf32> to vector<2x8x256xf32>
    %174 = arith.mulf %155, %173 : vector<2x8x256xf32>
    %cst_58 = arith.constant dense<0.000000e+00> : vector<2x8xf32>
    %175 = vector.multi_reduction <add>, %174, %cst_58 [2] : vector<2x8x256xf32> to vector<2x8xf32>
    %176 = tpu.concatenate %28, %49, %70, %91, %112, %133, %154, %175 in 1 : vector<2x8xf32>, vector<2x8xf32>, vector<2x8xf32>, vector<2x8xf32>, vector<2x8xf32>, vector<2x8xf32>, vector<2x8xf32>, vector<2x8xf32> -> vector<2x64xf32>
    %cst_59 = arith.constant dense<0.000000e+00> : vector<2x4xf32>
    %177 = tpu.matmul %176, %0, %cst_59 {dimension_numbers = #tpu.dot_dimension_numbers<[1], [0], [0], [1], [0, 0, 1, 1], [], []>} : vector<2x64xf32>, vector<64x4xf32>, vector<2x4xf32> -> vector<2x4xf32>
    %178 = vector.broadcast %4 : vector<1x4xf32> to vector<2x4xf32>
    %179 = arith.addf %177, %178 : vector<2x4xf32>
    %cst_60 = arith.constant dense<0.000000e+00> : vector<2xf32>
    %180 = vector.multi_reduction <add>, %179, %cst_60 [1] : vector<2x4xf32> to vector<2xf32>
    %181 = vector.shape_cast %180 : vector<2xf32> to vector<2x1xf32>
    %cst_61 = arith.constant 4.000000e+00 : f32
    %182 = vector.broadcast %cst_61 : f32 to vector<2x1xf32>
    %183 = arith.divf %181, %182 : vector<2x1xf32>
    %184 = vector.broadcast %183 : vector<2x1xf32> to vector<2x4xf32>
    %185 = arith.subf %179, %184 : vector<2x4xf32>
    %186 = arith.mulf %185, %185 : vector<2x4xf32>
    %cst_62 = arith.constant dense<0.000000e+00> : vector<2xf32>
    %187 = vector.multi_reduction <add>, %186, %cst_62 [1] : vector<2x4xf32> to vector<2xf32>
    %188 = vector.shape_cast %187 : vector<2xf32> to vector<2x1xf32>
    %cst_63 = arith.constant 4.000000e+00 : f32
    %189 = vector.broadcast %cst_63 : f32 to vector<2x1xf32>
    %190 = arith.divf %188, %189 : vector<2x1xf32>
    %191 = vector.broadcast %183 : vector<2x1xf32> to vector<2x4xf32>
    %192 = arith.subf %179, %191 : vector<2x4xf32>
    %cst_64 = arith.constant 9.99999974E-6 : f32
    %193 = vector.broadcast %cst_64 : f32 to vector<2x1xf32>
    %194 = arith.addf %190, %193 : vector<2x1xf32>
    %195 = math.rsqrt %194 : vector<2x1xf32>
    %196 = vector.broadcast %195 : vector<2x1xf32> to vector<2x4xf32>
    %197 = arith.mulf %192, %196 : vector<2x4xf32>
    %198 = vector.broadcast %5 : vector<1x4xf32> to vector<2x4xf32>
    %199 = arith.mulf %197, %198 : vector<2x4xf32>
    %200 = vector.broadcast %6 : vector<1x4xf32> to vector<2x4xf32>
    %201 = arith.addf %199, %200 : vector<2x4xf32>
    %cst_65 = arith.constant 0.000000e+00 : f32
    %202 = vector.broadcast %cst_65 : f32 to vector<2x4xf32>
    %203 = arith.maximumf %201, %202 : vector<2x4xf32>
    %cst_66 = arith.constant dense<0.000000e+00> : vector<2x64xf32>
    %204 = tpu.matmul %203, %2, %cst_66 {dimension_numbers = #tpu.dot_dimension_numbers<[1], [0], [0], [1], [0, 0, 1, 1], [], []>} : vector<2x4xf32>, vector<4x64xf32>, vector<2x64xf32> -> vector<2x64xf32>
    %205 = vector.broadcast %3 : vector<1x64xf32> to vector<2x64xf32>
    %206 = arith.addf %204, %205 : vector<2x64xf32>
    %c0_67 = arith.constant 0 : index
    %c0_68 = arith.constant 0 : index
    %c0_69 = arith.constant 0 : index
    %207 = vector.load %arg1[%c0_67, %c0_68, %c0_69] : memref<2x64x256xf32, #tpu.memory_space<vmem>>, vector<2x64x256xf32>
    %208 = vector.shape_cast %206 : vector<2x64xf32> to vector<2x64x1xf32>
    %209 = vector.broadcast %208 : vector<2x64x1xf32> to vector<2x64x256xf32>
    %210 = arith.addf %207, %209 : vector<2x64x256xf32>
    %c0_70 = arith.constant 0 : index
    %c0_71 = arith.constant 0 : index
    %c0_72 = arith.constant 0 : index
    %211 = vector.load %arg5[%c0_70, %c0_71, %c0_72] : memref<2x64x256xf32, #tpu.memory_space<vmem>>, vector<2x64x256xf32>
    tpu.vector_store %arg5[%c0_70, %c0_71, %c0_72], %210 {strides = array<i32>} : memref<2x64x256xf32, #tpu.memory_space<vmem>>, vector<2x64x256xf32>,
    return
  }
  func.func @transform_0(%arg0: i32) -> (i32, i32, i32) {
    %c0_i32 = arith.constant 0 : i32
    %c0_i32_0 = arith.constant 0 : i32
    %c0_i32_1 = arith.constant 0 : i32
    return %arg0, %c0_i32, %c0_i32_0 : i32, i32, i32
  }
  func.func @transform_1(%arg0: i32) -> (i32, i32) {
    %c0_i32 = arith.constant 0 : i32
    %c0_i32_0 = arith.constant 0 : i32
    %c0_i32_1 = arith.constant 0 : i32
    return %c0_i32, %c0_i32_0 : i32, i32
  }
  func.func @transform_2(%arg0: i32) -> (i32, i32) {
    %c0_i32 = arith.constant 0 : i32
    %c0_i32_0 = arith.constant 0 : i32
    %c0_i32_1 = arith.constant 0 : i32
    return %c0_i32, %c0_i32_0 : i32, i32
  }
  func.func @transform_3(%arg0: i32) -> (i32, i32) {
    %c0_i32 = arith.constant 0 : i32
    %c0_i32_0 = arith.constant 0 : i32
    %c0_i32_1 = arith.constant 0 : i32
    return %c0_i32, %c0_i32_0 : i32, i32
  }
  func.func @transform_4(%arg0: i32) -> (i32, i32, i32) {
    %c0_i32 = arith.constant 0 : i32
    %c0_i32_0 = arith.constant 0 : i32
    %c0_i32_1 = arith.constant 0 : i32
    return %arg0, %c0_i32, %c0_i32_0 : i32, i32, i32
  }
}

</mosaic_0001>

<bundles_post_ra>
// kernel: tpu_custom_call.1
= control target key start
LH: loop header
LB: loop body
LE: loop exit
PB: predicated region body
PF: predicated region fallthrough
CT: control target
= control target key end

     0   :  { %9 = vsyncpa [#allocation3], 0  ;;  %s2476_s0 = inlined_call_operand.hbm [shape: f32[2,64,256], index: 0, kind: input, shape index: {}]   ;;  %s2477_s1 = inlined_call_operand.vmem [shape: f32[64,5], index: 1, kind: input, shape index: {}]   ;;  %s2478_s2 = inlined_call_operand.vmem [shape: f32[5,64], index: 2, kind: input, shape index: {}]   ;;  %s2479_s3 = inlined_call_operand.vmem [shape: f32[4,4], index: 3, kind: input, shape index: {}]   ;;  %s2480_s4 = inlined_call_operand.hbm [shape: f32[2,64,256], index: 4, kind: output, shape index: {}]  }
   0x1   :  { %10 = vsyncpa [#allocation4], 0  ;;  %s1739_s15 = smov [#allocation2]  }
   0x2   :  { %s16_s16 = sshll.u32 %s1739_s15, 4  ;;  %s17_s16 = int_to_ptr.vmem [resolvable:$true] %s16_s16 }
   0x3   :  { %s1703_s17 = scalar_lea.vmem %s17_s16, 4096  ;;  %p1708_p1 = scmp.lt.s32.totalorder %s17_s16, %s17_s16 }
   0x4   :  { %p1704_p0 = scmp.ne.s32.totalorder %s17_s16, %s1703_s17  ;;  %p1709_p2 = scmp.lt.s32.totalorder %s1703_s17, %s1703_s17 }
   0x6   :  { %p1710_p3 = por %p1709_p2, %p1708_p1 }
   0x8   :  { %p1711_p4 = pnand %p1710_p3, %p1704_p0 }
   0xa   :  { %1714 = shalt.err (!%p1711_p4)
}
   0xb   :  { %s1740_s18 = smov 256   ;;  %s1741_s19 = smov 16  }
   0xc   :  { %22 = dma.hbm_to_vmem [thread:$0]  %s2476_s0, 4096, %s17_s16, [#allocation3], %s1740_s18, %s1740_s18, %s1741_s19  }
   0xd   :  { %1735 = dma.done.wait [#allocation3], 4096  }
   0xe   :  { %1736 = vsyncadd [#allocation3], 4294963200  ;;  %v1742_v0 = vmov 4   ;;  %v34_v1 = vld [vmem:[%s2477_s1 + $0x10] sm:$0xff]  ;;  %v32_v2 = vld [vmem:[%s2477_s1] sm:$0xff]  ;;  %vm95_vm0 = vcmask 1041409  }
   0xf   :  { %1556 = vset.pattern.permute.xlu1 %v1742_v0  ;;  %1555 = vset.pattern.permute.xlu0 %v1742_v0  ;;  %v35_v3 = vld [vmem:[%s2477_s1 + $0x18] sm:$0xff]  ;;  %v33_v4 = vld [vmem:[%s2477_s1 + $0x8] sm:$0xff]  ;;  %v45_v5 = vld [vmem:[%s2479_s3 + $0x3] sm:$0x1]  ;;  %vm100_vm1 = vcmask 1041408   ;;  %vm1744_vm2 = vmmov 0  }
  0x10   :  { %300 = vperm.xlu1 %1556, %v34_v1   ;;  %52 = vperm.xlu0 %1555, %v32_v2   ;;  %1546 = vpush %v45_v5  ;;  %v37_v6 = vld [vmem:[%s2477_s1 + $0x28] sm:$0xff]  ;;  %v36_v7 = vld [vmem:[%s2477_s1 + $0x20] sm:$0xff]  ;;  %v39_v8 = vld [vmem:[%s2477_s1 + $0x38] sm:$0xff]  ;;  %vm1125_vm3 = vcmask 64512   ;;  %vm1127_vm4 = vcmask 130048   ;;  %vm1129_vm5 = vcmask 195584  }
  0x11   :  { %v38_v9 = vld [vmem:[%s2477_s1 + $0x30] sm:$0xff]  ;;  %v294_v10 = vld [vmem:[#allocation2 + $0x20] sm:$0xff]  ;;  %v295_v11 = vld [vmem:[#allocation2 + $0x28] sm:$0xff]  ;;  %vm1131_vm6 = vcmask 261120   ;;  %vm1133_vm7 = vcmask 326656   ;;  %vm1135_vm8 = vcmask 392192  }
  0x12   :  { %v296_v12 = vld [vmem:[#allocation2 + $0xa0] sm:$0xff]  ;;  %v297_v13 = vld [vmem:[#allocation2 + $0xa8] sm:$0xff]  ;;  %v415_v57 = vld [vmem:[#allocation2 + $0x30] sm:$0xff]  ;;  %vm1137_vm9 = vcmask 457728   ;;  %vm1143_vm10 = vcmask 523264   ;;  %vm1217_vm11 = vcmask 25600  }
  0x13   :  { %v46_v14 = vld [vmem:[#allocation2] sm:$0xff]  ;;  %v47_v15 = vld [vmem:[#allocation2 + $0x8] sm:$0xff]  ;;  %v416_v58 = vld [vmem:[#allocation2 + $0x38] sm:$0xff]  ;;  %vm1251_vm12 = vcmask 1043456   ;;  %vm1247_vm13 = vcmask 31744  }
  0x14   :  { %421 = vperm.xlu1 %1556, %v35_v3   ;;  %179 = vperm.xlu0 %1555, %v33_v4   ;;  %v48_v16 = vld [vmem:[#allocation2 + $0x80] sm:$0xff]  ;;  %v49_v17 = vld [vmem:[#allocation2 + $0x88] sm:$0xff]  ;;  %v417_v59 = vld [vmem:[#allocation2 + $0xb0] sm:$0xff] }
  0x15   :  { %v418_v0 = vld [vmem:[#allocation2 + $0xb8] sm:$0xff]  ;;  %v173_v2 = vld [vmem:[#allocation2 + $0x10] sm:$0xff] }
  0x16   :  { %v174_v3 = vld [vmem:[#allocation2 + $0x18] sm:$0xff] }
  0x18   :  { %663 = vperm.xlu1 %1556, %v37_v6   ;;  %542 = vperm.xlu0 %1555, %v36_v7  }
  0x1c   :  { %905 = vperm.xlu1 %1556, %v39_v8   ;;  %784 = vperm.xlu0 %1555, %v38_v9   ;;  %v175_v8 = vld [vmem:[#allocation2 + $0x90] sm:$0xff]  ;;  %v176_v9 = vld [vmem:[#allocation2 + $0x98] sm:$0xff] }
  0x41   :  { %s1547_s13 = spop %1546 }
  0x42   :  { %v1804_v20 = vstv %s1547_s13 }
  0x8b   :  { %v301_v18 = vpop.permute.xlu1 %300  ;;  %v53_v19 = vpop.permute.xlu0 %52 }
  0x8c   :  { %v303_v21 = vmul.f32 %v301_v18, %v294_v10  ;;  %v304_v22 = vmul.f32 %v301_v18, %v295_v11  ;;  %v305_v23 = vmul.f32 %v301_v18, %v296_v12  ;;  %v306_v24 = vmul.f32 %v301_v18, %v297_v13 }
  0x8d   :  { %v55_v25 = vmul.f32 %v53_v19, %v46_v14  ;;  %v56_v26 = vmul.f32 %v53_v19, %v47_v15  ;;  %v57_v27 = vmul.f32 %v53_v19, %v48_v16  ;;  %v58_v28 = vmul.f32 %v53_v19, %v49_v17 }
  0x8e   :  { %v307_v29 = vrot.slane %v303_v21, 4  ;;  %v313_v30 = vrot.slane %v304_v22, 4  ;;  %v319_v31 = vrot.slane %v305_v23, 4  ;;  %v325_v32 = vrot.slane %v306_v24, 4 }
  0x8f   :  { %v59_v33 = vrot.slane %v55_v25, 4  ;;  %v65_v34 = vrot.slane %v56_v26, 4  ;;  %v71_v35 = vrot.slane %v57_v27, 4  ;;  %v77_v36 = vrot.slane %v58_v28, 4  ;;  %v422_v1 = vpop.permute.xlu1 %421  ;;  %v180_v10 = vpop.permute.xlu0 %179 }
  0x90   :  { %v308_v37 = vadd.f32 %v307_v29, %v303_v21  ;;  %v314_v38 = vadd.f32 %v313_v30, %v304_v22  ;;  %v320_v39 = vadd.f32 %v319_v31, %v305_v23  ;;  %v326_v40 = vadd.f32 %v325_v32, %v306_v24 }
  0x91   :  { %v60_v41 = vadd.f32 %v59_v33, %v55_v25  ;;  %v66_v42 = vadd.f32 %v65_v34, %v56_v26  ;;  %v72_v43 = vadd.f32 %v71_v35, %v57_v27  ;;  %v78_v44 = vadd.f32 %v77_v36, %v58_v28 }
  0x92   :  { %v309_v45 = vrot.slane %v308_v37, 2  ;;  %v315_v46 = vrot.slane %v314_v38, 2  ;;  %v321_v47 = vrot.slane %v320_v39, 2  ;;  %v327_v48 = vrot.slane %v326_v40, 2 }
  0x93   :  { %v61_v49 = vrot.slane %v60_v41, 2  ;;  %v67_v50 = vrot.slane %v66_v42, 2  ;;  %v73_v51 = vrot.slane %v72_v43, 2  ;;  %v79_v52 = vrot.slane %v78_v44, 2 }
  0x94   :  { %v1806_v53 = vadd.f32 %v309_v45, %v308_v37  ;;  %v1808_v54 = vadd.f32 %v315_v46, %v314_v38  ;;  %v1810_v55 = vadd.f32 %v321_v47, %v320_v39  ;;  %v1812_v56 = vadd.f32 %v327_v48, %v326_v40 }
  0x95   :  { %v1814_v60 = vadd.f32 %v61_v49, %v60_v41  ;;  %v1816_v61 = vadd.f32 %v67_v50, %v66_v42  ;;  %v1818_v62 = vadd.f32 %v73_v51, %v72_v43  ;;  %v1820_v63 = vadd.f32 %v79_v52, %v78_v44  ;;  %v657_v52 = vld [vmem:[#allocation2 + $0x50] sm:$0xff] }
  0x96   :  { %v311_v4 = vrot.slane %v1806_v53, 1  ;;  %v317_v5 = vrot.slane %v1808_v54, 1  ;;  %v424_v15 = vmul.f32 %v422_v1, %v415_v57  ;;  %v425_v16 = vmul.f32 %v422_v1, %v416_v58  ;;  %v658_v57 = vld [vmem:[#allocation2 + $0x58] sm:$0xff]  ;;  %v659_v58 = vld [vmem:[#allocation2 + $0xd0] sm:$0xff] }
  0x97   :  { %v63_v11 = vrot.slane %v1814_v60, 1  ;;  %v69_v12 = vrot.slane %v1816_v61, 1  ;;  %v75_v13 = vrot.slane %v1818_v62, 1  ;;  %v81_v14 = vrot.slane %v1820_v63, 1 }
  0x98   :  { %v426_v17 = vmul.f32 %v422_v1, %v417_v59  ;;  %v427_v18 = vmul.f32 %v422_v1, %v418_v0  ;;  %v182_v19 = vmul.f32 %v180_v10, %v173_v2  ;;  %v183_v21 = vmul.f32 %v180_v10, %v174_v3  ;;  %v660_v3 = vld [vmem:[#allocation2 + $0xd8] sm:$0xff] }
  0x99   :  { %v184_v22 = vmul.f32 %v180_v10, %v175_v8  ;;  %v185_v23 = vmul.f32 %v180_v10, %v176_v9  ;;  %v428_v24 = vrot.slane %v424_v15, 4  ;;  %v434_v25 = vrot.slane %v425_v16, 4  ;;  %v664_v8 = vpop.permute.xlu1 %663  ;;  %v536_v9 = vld [vmem:[#allocation2 + $0x40] sm:$0xff]  ;;  %v537_v10 = vld [vmem:[#allocation2 + $0x48] sm:$0xff] }
  0x9a   :  { %v440_v26 = vrot.slane %v426_v17, 4  ;;  %v446_v27 = vrot.slane %v427_v18, 4  ;;  %v186_v28 = vrot.slane %v182_v19, 4  ;;  %v192_v29 = vrot.slane %v183_v21, 4 }
  0x9b   :  { %v198_v30 = vrot.slane %v184_v22, 4  ;;  %v204_v31 = vrot.slane %v185_v23, 4  ;;  %v429_v32 = vadd.f32 %v428_v24, %v424_v15  ;;  %v435_v33 = vadd.f32 %v434_v25, %v425_v16 }
  0x9c   :  { %v441_v34 = vadd.f32 %v440_v26, %v426_v17  ;;  %v447_v35 = vadd.f32 %v446_v27, %v427_v18  ;;  %v187_v36 = vadd.f32 %v186_v28, %v182_v19  ;;  %v193_v37 = vadd.f32 %v192_v29, %v183_v21  ;;  %v538_v19 = vld [vmem:[#allocation2 + $0xc0] sm:$0xff]  ;;  %v539_v21 = vld [vmem:[#allocation2 + $0xc8] sm:$0xff] }
  0x9d   :  { %v199_v38 = vadd.f32 %v198_v30, %v184_v22  ;;  %v205_v39 = vadd.f32 %v204_v31, %v185_v23  ;;  %v430_v40 = vrot.slane %v429_v32, 2  ;;  %v436_v41 = vrot.slane %v435_v33, 2  ;;  %v543_v22 = vpop.permute.xlu0 %542 }
  0x9e   :  { %v442_v42 = vrot.slane %v441_v34, 2  ;;  %v448_v43 = vrot.slane %v447_v35, 2  ;;  %v188_v44 = vrot.slane %v187_v36, 2  ;;  %v194_v45 = vrot.slane %v193_v37, 2 }
  0x9f   :  { %v200_v46 = vrot.slane %v199_v38, 2  ;;  %v206_v47 = vrot.slane %v205_v39, 2  ;;  %v1830_v48 = vadd.f32 %v430_v40, %v429_v32  ;;  %v1832_v49 = vadd.f32 %v436_v41, %v435_v33 }
  0xa0   :  { %v1834_v50 = vadd.f32 %v442_v42, %v441_v34  ;;  %v1836_v51 = vadd.f32 %v448_v43, %v447_v35  ;;  %v1838_v59 = vadd.f32 %v188_v44, %v187_v36  ;;  %v1840_v0 = vadd.f32 %v194_v45, %v193_v37 }
  0xa1   :  { %v1842_v1 = vadd.f32 %v200_v46, %v199_v38  ;;  %v1844_v2 = vadd.f32 %v206_v47, %v205_v39  ;;  %v666_v27 = vmul.f32 %v664_v8, %v657_v52  ;;  %v667_v28 = vmul.f32 %v664_v8, %v658_v57 }
  0xa2   :  { %v668_v29 = vmul.f32 %v664_v8, %v659_v58  ;;  %v669_v30 = vmul.f32 %v664_v8, %v660_v3  ;;  %v545_v31 = vmul.f32 %v543_v22, %v536_v9  ;;  %v546_v32 = vmul.f32 %v543_v22, %v537_v10 }
  0xa3   :  { %v547_v33 = vmul.f32 %v543_v22, %v538_v19  ;;  %v548_v34 = vmul.f32 %v543_v22, %v539_v21  ;;  %v670_v35 = vrot.slane %v666_v27, 4  ;;  %v676_v36 = vrot.slane %v667_v28, 4 }
  0xa4   :  { %v682_v37 = vrot.slane %v668_v29, 4  ;;  %v688_v38 = vrot.slane %v669_v30, 4  ;;  %v549_v39 = vrot.slane %v545_v31, 4  ;;  %v555_v40 = vrot.slane %v546_v32, 4 }
  0xa5   :  { %v561_v41 = vrot.slane %v547_v33, 4  ;;  %v567_v42 = vrot.slane %v548_v34, 4  ;;  %v671_v43 = vadd.f32 %v670_v35, %v666_v27  ;;  %v677_v44 = vadd.f32 %v676_v36, %v667_v28  ;;  %v902_v36 = vld [vmem:[#allocation2 + $0xf8] sm:$0xff] }
  0xa6   :  { %v683_v45 = vadd.f32 %v682_v37, %v668_v29  ;;  %v689_v46 = vadd.f32 %v688_v38, %v669_v30  ;;  %v550_v47 = vadd.f32 %v549_v39, %v545_v31  ;;  %v556_v52 = vadd.f32 %v555_v40, %v546_v32  ;;  %v899_v29 = vld [vmem:[#allocation2 + $0x70] sm:$0xff]  ;;  %v900_v30 = vld [vmem:[#allocation2 + $0x78] sm:$0xff]  ;;  %v906_v37 = vpop.permute.xlu1 %905  ;;  %v778_v38 = vld [vmem:[#allocation2 + $0x60] sm:$0xff] }
  0xa7   :  { %v562_v57 = vadd.f32 %v561_v41, %v547_v33  ;;  %v568_v58 = vadd.f32 %v567_v42, %v548_v34  ;;  %v672_v3 = vrot.slane %v671_v43, 2  ;;  %v678_v8 = vrot.slane %v677_v44, 2  ;;  %v901_v31 = vld [vmem:[#allocation2 + $0xf0] sm:$0xff]  ;;  %v779_v39 = vld [vmem:[#allocation2 + $0x68] sm:$0xff] }
  0xa8   :  { %v684_v9 = vrot.slane %v683_v45, 2  ;;  %v690_v10 = vrot.slane %v689_v46, 2  ;;  %v551_v19 = vrot.slane %v550_v47, 2  ;;  %v557_v21 = vrot.slane %v556_v52, 2 }
  0xa9   :  { %v563_v22 = vrot.slane %v562_v57, 2  ;;  %v569_v18 = vrot.slane %v568_v58, 2  ;;  %v1854_v17 = vadd.f32 %v672_v3, %v671_v43  ;;  %v1856_v16 = vadd.f32 %v678_v8, %v677_v44  ;;  %v780_v44 = vld [vmem:[#allocation2 + $0xe0] sm:$0xff] }
  0xaa   :  { %v1858_v27 = vadd.f32 %v684_v9, %v683_v45  ;;  %v1860_v28 = vadd.f32 %v690_v10, %v689_v46  ;;  %v1862_v32 = vadd.f32 %v551_v19, %v550_v47  ;;  %v1864_v33 = vadd.f32 %v557_v21, %v556_v52  ;;  %v781_v45 = vld [vmem:[#allocation2 + $0xe8] sm:$0xff]  ;;  %v785_v46 = vpop.permute.xlu0 %784 }
  0xab   :  { %v1866_v34 = vadd.f32 %v563_v22, %v562_v57  ;;  %v1868_v35 = vadd.f32 %v569_v18, %v568_v58  ;;  %v908_v58 = vmul.f32 %v906_v37, %v899_v29  ;;  %v909_v3 = vmul.f32 %v906_v37, %v900_v30 }
  0xac   :  { %v910_v8 = vmul.f32 %v906_v37, %v901_v31  ;;  %v911_v9 = vmul.f32 %v906_v37, %v902_v36  ;;  %v787_v10 = vmul.f32 %v785_v46, %v778_v38  ;;  %v788_v19 = vmul.f32 %v785_v46, %v779_v39 }
  0xad   :  { %v789_v21 = vmul.f32 %v785_v46, %v780_v44  ;;  %v790_v22 = vmul.f32 %v785_v46, %v781_v45  ;;  %v912_v43 = vrot.slane %v908_v58, 4  ;;  %v918_v42 = vrot.slane %v909_v3, 4 }
  0xae   :  { %v924_v41 = vrot.slane %v910_v8, 4  ;;  %v930_v40 = vrot.slane %v911_v9, 4  ;;  %v791_v15 = vrot.slane %v787_v10, 4  ;;  %v797_v47 = vrot.slane %v788_v19, 4 }
  0xaf   :  { %v803_v26 = vrot.slane %v789_v21, 4  ;;  %v809_v18 = vrot.slane %v790_v22, 4  ;;  %v913_v25 = vadd.f32 %v912_v43, %v908_v58  ;;  %v919_v52 = vadd.f32 %v918_v42, %v909_v3 }
  0xb0   :  { %v925_v24 = vadd.f32 %v924_v41, %v910_v8  ;;  %v931_v57 = vadd.f32 %v930_v40, %v911_v9  ;;  %v792_v29 = vadd.f32 %v791_v15, %v787_v10  ;;  %v798_v30 = vadd.f32 %v797_v47, %v788_v19 }
  0xb1   :  { %v804_v31 = vadd.f32 %v803_v26, %v789_v21  ;;  %v810_v36 = vadd.f32 %v809_v18, %v790_v22  ;;  %v914_v37 = vrot.slane %v913_v25, 2  ;;  %v920_v38 = vrot.slane %v919_v52, 2 }
  0xb2   :  { %v926_v39 = vrot.slane %v925_v24, 2  ;;  %v932_v44 = vrot.slane %v931_v57, 2  ;;  %v793_v45 = vrot.slane %v792_v29, 2  ;;  %v799_v46 = vrot.slane %v798_v30, 2 }
  0xb3   :  { %v805_v23 = vrot.slane %v804_v31, 2  ;;  %v811_v7 = vrot.slane %v810_v36, 2  ;;  %v1878_v6 = vadd.f32 %v914_v37, %v913_v25  ;;  %v1880_v43 = vadd.f32 %v920_v38, %v919_v52 }
  0xb4   :  { %v1882_v41 = vadd.f32 %v926_v39, %v925_v24  ;;  %v1884_v15 = vadd.f32 %v932_v44, %v931_v57  ;;  %v1886_v26 = vadd.f32 %v793_v45, %v792_v29  ;;  %v1888_v40 = vadd.f32 %v799_v46, %v798_v30 }
  0xb5   :  { %v1890_v42 = vadd.f32 %v805_v23, %v804_v31  ;;  %v1892_v47 = vadd.f32 %v811_v7, %v810_v36  ;;  %v916_v18 = vrot.slane %v1878_v6, 1  ;;  %v922_v58 = vrot.slane %v1880_v43, 1 }
  0xb6   :  { %v928_v25 = vrot.slane %v1882_v41, 1  ;;  %v934_v52 = vrot.slane %v1884_v15, 1  ;;  %v795_v24 = vrot.slane %v1886_v26, 1  ;;  %v801_v57 = vrot.slane %v1888_v40, 1 }
  0xb7   :  { %v807_v3 = vrot.slane %v1890_v42, 1  ;;  %v813_v8 = vrot.slane %v1892_v47, 1  ;;  %v64_v7 = vadd.f32 %v63_v11, %v1814_v60  ;;  %v70_v23 = vadd.f32 %v69_v12, %v1816_v61 }
  0xb8   :  { %v76_v9 = vadd.f32 %v75_v13, %v1818_v62  ;;  %v82_v10 = vadd.f32 %v81_v14, %v1820_v63  ;;  %v312_v19 = vadd.f32 %v311_v4, %v1806_v53  ;;  %v318_v60 = vadd.f32 %v317_v5, %v1808_v54 }
  0xb9   :  { %v2481_v11 = vrot.slane %v1810_v55, 1  ;;  %v2482_v12 = vrot.slane %v1812_v56, 1  ;;  %v1927_v13 = vadd.f32 %v1804_v20, %v64_v7  ;;  %v1930_v63 = vadd.f32 %v1804_v20, %v70_v23 }
  0xba   :  { %v1933_v53 = vadd.f32 %v1804_v20, %v76_v9  ;;  %v1936_v4 = vadd.f32 %v1804_v20, %v82_v10  ;;  %v1939_v54 = vadd.f32 %v312_v19, %v1804_v20  ;;  %v2483_v22 = vrot.slane %v1838_v59, 1 }
  0xbb   :  { %v324_v61 = vadd.f32 %v2481_v11, %v1810_v55  ;;  %v330_v62 = vadd.f32 %v2482_v12, %v1812_v56  ;;  %v1942_v55 = vadd.f32 %v318_v60, %v1804_v20  ;;  %v2484_v30 = vrot.slane %v1840_v0, 1 }
  0xbc   :  { %v96_v14 = vsel %vm95_vm0, %v1933_v53, %v1927_v13  ;;  %v97_v21 = vsel %vm95_vm0, %v1936_v4, %v1930_v63  ;;  %v191_v29 = vadd.f32 %v2483_v22, %v1838_v59  ;;  %v2486_v23 = vrot.slane %v1844_v2, 1 }
  0xbd   :  { %v1945_v56 = vadd.f32 %v324_v61, %v1804_v20  ;;  %v1948_v5 = vadd.f32 %v330_v62, %v1804_v20  ;;  %v197_v31 = vadd.f32 %v2484_v30, %v1840_v0  ;;  %v101_v36 = vsel %vm100_vm1, %v96_v14, -inf }
  0xbe   :  { %v102_v37 = vsel %vm100_vm1, %v97_v21, -inf  ;;  %v2485_v0 = vrot.slane %v1842_v1, 1  ;;  %v209_v9 = vadd.f32 %v2486_v23, %v1844_v2  ;;  %v1979_v10 = vadd.f32 %v191_v29, %v1804_v20 }
  0xbf   :  { %v339_v38 = vsel %vm95_vm0, %v1945_v56, %v1939_v54  ;;  %v340_v39 = vsel %vm95_vm0, %v1948_v5, %v1942_v55  ;;  %v103_v44 = vmax.f32 %v101_v36, %v102_v37  ;;  %v1982_v19 = vadd.f32 %v197_v31, %v1804_v20 }
  0xc0   :  { %v343_v45 = vsel %vm100_vm1, %v339_v38, -inf  ;;  %v344_v59 = vsel %vm100_vm1, %v340_v39, -inf  ;;  %v203_v46 = vadd.f32 %v2485_v0, %v1842_v1  ;;  %v2487_v11 = vrot.slane %v1830_v48, 1 }
  0xc1   :  { %v345_v7 = vmax.f32 %v343_v45, %v344_v59  ;;  %104 = vmax.xlane.f32.xlu0 %v103_v44  ;;  %v2488_v1 = vrot.slane %v1832_v49, 1  ;;  %v2489_v2 = vrot.slane %v1834_v50, 1  ;;  %v1997_v14 = vadd.f32 %v209_v9, %v1804_v20 }
  0xc2   :  { %v1985_v60 = vadd.f32 %v203_v46, %v1804_v20  ;;  %v433_v61 = vadd.f32 %v2487_v11, %v1830_v48  ;;  %v2490_v21 = vrot.slane %v1836_v51, 1  ;;  %v2491_v29 = vrot.slane %v1862_v32, 1 }
  0xc3   :  { %v439_v12 = vadd.f32 %v2488_v1, %v1832_v49  ;;  %v445_v62 = vadd.f32 %v2489_v2, %v1834_v50  ;;  %v2492_v48 = vrot.slane %v1864_v33, 1  ;;  %v2493_v38 = vrot.slane %v1866_v34, 1 }
  0xc4   :  { %v451_v22 = vadd.f32 %v2490_v21, %v1836_v51  ;;  %v554_v30 = vadd.f32 %v2491_v29, %v1862_v32  ;;  %v218_v49 = vsel %vm95_vm0, %v1985_v60, %v1979_v10  ;;  %v2012_v50 = vadd.f32 %v433_v61, %v1804_v20 }
  0xc5   :  { %v560_v31 = vadd.f32 %v2492_v48, %v1864_v33  ;;  %v2015_v36 = vadd.f32 %v439_v12, %v1804_v20  ;;  %v2018_v51 = vadd.f32 %v445_v62, %v1804_v20  ;;  %v219_v32 = vsel %vm95_vm0, %v1997_v14, %v1982_v19  ;;  %346 = vmax.xlane.f32.xlu0 %v345_v7 }
  0xc6   :  { %v222_v37 = vsel %vm100_vm1, %v218_v49, -inf  ;;  %v2025_v33 = vadd.f32 %v451_v22, %v1804_v20  ;;  %v566_v39 = vadd.f32 %v2493_v38, %v1866_v34  ;;  %v223_v44 = vsel %vm100_vm1, %v219_v32, -inf }
  0xc7   :  { %v460_v45 = vsel %vm95_vm0, %v2018_v51, %v2012_v50  ;;  %v2494_v59 = vrot.slane %v1868_v35, 1  ;;  %v2038_v46 = vadd.f32 %v554_v30, %v1804_v20  ;;  %v224_v23 = vmax.f32 %v222_v37, %v223_v44 }
  0xc8   :  { %v461_v9 = vsel %vm95_vm0, %v2025_v33, %v2015_v36  ;;  %v464_v34 = vsel %vm100_vm1, %v460_v45, -inf  ;;  %v2045_v7 = vadd.f32 %v560_v31, %v1804_v20  ;;  %v2049_v61 = vadd.f32 %v566_v39, %v1804_v20 }
  0xc9   :  { %v572_v0 = vadd.f32 %v2494_v59, %v1868_v35  ;;  %v465_v11 = vsel %vm100_vm1, %v461_v9, -inf  ;;  %v2495_v1 = vrot.slane %v1854_v17, 1  ;;  %225 = vmax.xlane.f32.xlu1 %v224_v23  ;;  %v2496_v62 = vrot.slane %v1856_v16, 1 }
  0xca   :  { %v466_v2 = vmax.f32 %v464_v34, %v465_v11  ;;  %v2497_v22 = vrot.slane %v1858_v27, 1  ;;  %v2498_v30 = vrot.slane %v1860_v28, 1  ;;  %v581_v31 = vsel %vm95_vm0, %v2049_v61, %v2038_v46 }
  0xcb   :  { %v2052_v35 = vadd.f32 %v572_v0, %v1804_v20  ;;  %v675_v12 = vadd.f32 %v2495_v1, %v1854_v17  ;;  %v681_v21 = vadd.f32 %v2496_v62, %v1856_v16  ;;  %v796_v16 = vadd.f32 %v795_v24, %v1886_v26 }
  0xcc   :  { %v687_v29 = vadd.f32 %v2497_v22, %v1858_v27  ;;  %v693_v48 = vadd.f32 %v2498_v30, %v1860_v28  ;;  %467 = vmax.xlane.f32.xlu0 %v466_v2  ;;  %v585_v27 = vsel %vm100_vm1, %v581_v31, -inf  ;;  %v802_v44 = vadd.f32 %v801_v57, %v1888_v40 }
  0xcd   :  { %v582_v17 = vsel %vm95_vm0, %v2052_v35, %v2045_v7  ;;  %v2073_v49 = vadd.f32 %v675_v12, %v1804_v20  ;;  %v2081_v32 = vadd.f32 %v681_v21, %v1804_v20  ;;  %v808_v26 = vadd.f32 %v807_v3, %v1890_v42 }
  0xce   :  { %v586_v28 = vsel %vm100_vm1, %v582_v17, -inf  ;;  %v2084_v37 = vadd.f32 %v687_v29, %v1804_v20  ;;  %v2087_v39 = vadd.f32 %v693_v48, %v1804_v20  ;;  %v814_v45 = vadd.f32 %v813_v8, %v1892_v47 }
  0xcf   :  { %v587_v38 = vmax.f32 %v585_v27, %v586_v28  ;;  %v2102_v59 = vadd.f32 %v796_v16, %v1804_v20  ;;  %v917_v0 = vadd.f32 %v916_v18, %v1878_v6  ;;  %v2112_v57 = vadd.f32 %v802_v44, %v1804_v20 }
  0xd0   :  { %v702_v24 = vsel %vm95_vm0, %v2084_v37, %v2073_v49  ;;  %v703_v40 = vsel %vm95_vm0, %v2087_v39, %v2081_v32  ;;  %v2115_v3 = vadd.f32 %v808_v26, %v1804_v20  ;;  %v2119_v8 = vadd.f32 %v814_v45, %v1804_v20 }
  0xd1   :  { %588 = vmax.xlane.f32.xlu1 %v587_v38  ;;  %v706_v42 = vsel %vm100_vm1, %v702_v24, -inf  ;;  %v707_v47 = vsel %vm100_vm1, %v703_v40, -inf  ;;  %v923_v6 = vadd.f32 %v922_v58, %v1880_v43  ;;  %v929_v18 = vadd.f32 %v928_v25, %v1882_v41 }
  0xd2   :  { %v708_v23 = vmax.f32 %v706_v42, %v707_v47  ;;  %v823_v9 = vsel %vm95_vm0, %v2115_v3, %v2102_v59  ;;  %v935_v34 = vadd.f32 %v934_v52, %v1884_v15  ;;  %v2134_v11 = vadd.f32 %v917_v0, %v1804_v20 }
  0xd3   :  { %v824_v43 = vsel %vm95_vm0, %v2119_v8, %v2112_v57  ;;  %v827_v58 = vsel %vm100_vm1, %v823_v9, -inf  ;;  %v2141_v41 = vadd.f32 %v923_v6, %v1804_v20  ;;  %v2144_v25 = vadd.f32 %v929_v18, %v1804_v20 }
  0xd4   :  { %709 = vmax.xlane.f32.xlu0 %v708_v23  ;;  %v828_v1 = vsel %vm100_vm1, %v824_v43, -inf  ;;  %v2148_v15 = vadd.f32 %v935_v34, %v1804_v20 }
  0xd5   :  { %v829_v52 = vmax.f32 %v827_v58, %v828_v1  ;;  %v944_v12 = vsel %vm95_vm0, %v2144_v25, %v2134_v11 }
  0xd6   :  { %v945_v2 = vsel %vm95_vm0, %v2148_v15, %v2141_v41  ;;  %v948_v62 = vsel %vm100_vm1, %v944_v12, -inf }
  0xd7   :  { %830 = vmax.xlane.f32.xlu1 %v829_v52  ;;  %v949_v21 = vsel %vm100_vm1, %v945_v2, -inf }
  0xd8   :  { %v950_v22 = vmax.f32 %v948_v62, %v949_v21 }
  0xda   :  { %951 = vmax.xlane.f32.xlu0 %v950_v22 }
 0x14a   :  { %v105_v29 = vpop.xlane.xlu0 %104 }
 0x14b   :  { %v107_v30 = vrot.slane %v105_v29, 1  ;;  %v110_v20 = vsub.f32 %v1927_v13, %v105_v29  ;;  %v111_v48 = vsub.f32 %v1930_v63, %v105_v29 }
 0x14d   :  { %v112_v31 = vsub.f32 %v1933_v53, %v107_v30  ;;  %v113_v17 = vsub.f32 %v1936_v4, %v107_v30  ;;  %v114_v16 = vmul.f32 1.442695, %v110_v20  ;;  %v116_v24 = vmul.f32 1.442695, %v111_v48 }
 0x14e   :  { %v347_v27 = vpop.xlane.xlu0 %346 }
 0x14f   :  { %v118_v28 = vmul.f32 1.442695, %v112_v31  ;;  %v349_v38 = vrot.slane %v347_v27, 1  ;;  %v120_v44 = vmul.f32 1.442695, %v113_v17  ;;  %v352_v26 = vsub.f32 %v1939_v54, %v347_v27 }
 0x150   :  { %1557 = vpow2.f32 %v114_v16  ;;  %v353_v53 = vsub.f32 %v1942_v55, %v347_v27 }
 0x151   :  { %v354_v0 = vsub.f32 %v1945_v56, %v349_v38  ;;  %1559 = vpow2.f32 %v118_v28  ;;  %v355_v4 = vsub.f32 %v1948_v5, %v349_v38  ;;  %v356_v42 = vmul.f32 1.442695, %v352_v26 }
 0x152   :  { %v226_v45 = vpop.xlane.xlu1 %225  ;;  %1561 = vpow2.f32 %v120_v44  ;;  %v358_v43 = vmul.f32 1.442695, %v353_v53 }
 0x153   :  { %v228_v40 = vrot.slane %v226_v45, 1  ;;  %v231_v13 = vsub.f32 %v1979_v10, %v226_v45  ;;  %v232_v63 = vsub.f32 %v1982_v19, %v226_v45  ;;  %1563 = vpow2.f32 %v116_v24 }
 0x154   :  { %v360_v56 = vmul.f32 1.442695, %v354_v0  ;;  %1565 = vpow2.f32 %v356_v42  ;;  %v362_v58 = vmul.f32 1.442695, %v355_v4 }
 0x155   :  { %v233_v47 = vsub.f32 %v1985_v60, %v228_v40  ;;  %v234_v54 = vsub.f32 %v1997_v14, %v228_v40  ;;  %v235_v6 = vmul.f32 1.442695, %v231_v13  ;;  %v468_v18 = vpop.xlane.xlu0 %467  ;;  %v237_v23 = vmul.f32 1.442695, %v232_v63 }
 0x156   :  { %v470_v5 = vrot.slane %v468_v18, 1  ;;  %v473_v60 = vsub.f32 %v2012_v50, %v468_v18 }
 0x157   :  { %v239_v9 = vmul.f32 1.442695, %v233_v47  ;;  %v241_v10 = vmul.f32 1.442695, %v234_v54  ;;  %1567 = vpow2.f32 %v235_v6 }
 0x158   :  { %v475_v21 = vsub.f32 %v2018_v51, %v470_v5  ;;  %v476_v50 = vsub.f32 %v2025_v33, %v470_v5  ;;  %v477_v29 = vmul.f32 1.442695, %v473_v60 }
 0x159   :  { %1569 = vpow2.f32 %v239_v9 }
 0x15a   :  { %v589_v19 = vpop.xlane.xlu1 %588  ;;  %1571 = vpow2.f32 %v241_v10  ;;  %v481_v51 = vmul.f32 1.442695, %v475_v21  ;;  %v483_v16 = vmul.f32 1.442695, %v476_v50 }
 0x15b   :  { %v591_v34 = vrot.slane %v589_v19, 1  ;;  %v594_v55 = vsub.f32 %v2038_v46, %v589_v19  ;;  %v595_v14 = vsub.f32 %v2045_v7, %v589_v19  ;;  %1573 = vpow2.f32 %v237_v23 }
 0x15c   :  { %1575 = vpow2.f32 %v360_v56  ;;  %v474_v46 = vsub.f32 %v2015_v36, %v468_v18 }
 0x15d   :  { %v596_v1 = vsub.f32 %v2049_v61, %v591_v34  ;;  %v597_v52 = vsub.f32 %v2052_v35, %v591_v34  ;;  %v598_v12 = vmul.f32 1.442695, %v594_v55  ;;  %v710_v2 = vpop.xlane.xlu0 %709  ;;  %1577 = vpow2.f32 %v362_v58  ;;  %v2181_v36 = vpop.eup %1557 }
 0x15e   :  { %1579 = vpow2.f32 %v358_v43  ;;  %v600_v7 = vmul.f32 1.442695, %v595_v14  ;;  %v712_v61 = vrot.slane %v710_v2, 1  ;;  %v715_v35 = vsub.f32 %v2073_v49, %v710_v2  ;;  %v2184_v33 = vpop.eup %1559 }
 0x15f   :  { %v602_v62 = vmul.f32 1.442695, %v596_v1  ;;  %v604_v22 = vmul.f32 1.442695, %v597_v52  ;;  %1581 = vpow2.f32 %v598_v12  ;;  %v716_v17 = vsub.f32 %v2081_v32, %v710_v2  ;;  %v2190_v38 = vpop.eup %1561 }
 0x160   :  { %v831_v30 = vpop.xlane.xlu1 %830  ;;  %v718_v44 = vsub.f32 %v2087_v39, %v712_v61  ;;  %v2194_v26 = vpop.eup %1563  ;;  %v719_v45 = vmul.f32 1.442695, %v715_v35  ;;  %v128_v39 = vrot.slane %v2190_v38, 7 }
 0x161   :  { %v833_v20 = vrot.slane %v831_v30, 1  ;;  %v836_v48 = vsub.f32 %v2102_v59, %v831_v30  ;;  %v837_v31 = vsub.f32 %v2112_v57, %v831_v30  ;;  %1583 = vpow2.f32 %v602_v62  ;;  %v2196_v0 = vpop.eup %1565 }
 0x162   :  { %1585 = vpow2.f32 %v604_v22  ;;  %v479_v59 = vmul.f32 1.442695, %v474_v46  ;;  %v717_v57 = vsub.f32 %v2084_v37, %v712_v61  ;;  %v126_v37 = vrot.slane %v2184_v33, 7 }
 0x163   :  { %v838_v27 = vsub.f32 %v2115_v3, %v833_v20  ;;  %v839_v49 = vsub.f32 %v2119_v8, %v833_v20  ;;  %v2188_v28 = vpop.xlane.xlu0 %951  ;;  %1587 = vpow2.f32 %v600_v7  ;;  %v840_v32 = vmul.f32 1.442695, %v836_v48 }
 0x164   :  { %1589 = vpow2.f32 %v477_v29  ;;  %v842_v24 = vmul.f32 1.442695, %v837_v31  ;;  %v721_v8 = vmul.f32 1.442695, %v716_v17  ;;  %v954_v40 = vrot.slane %v2188_v28, 1  ;;  %v2199_v13 = vpop.eup %1567 }
 0x165   :  { %1591 = vpow2.f32 %v481_v51  ;;  %v844_v3 = vmul.f32 1.442695, %v838_v27  ;;  %v846_v63 = vmul.f32 1.442695, %v839_v49  ;;  %v723_v4 = vmul.f32 1.442695, %v717_v57 }
 0x166   :  { %1593 = vpow2.f32 %v483_v16  ;;  %v2203_v53 = vpop.eup %1569  ;;  %v725_v42 = vmul.f32 1.442695, %v718_v44  ;;  %v959_v47 = vsub.f32 %v2144_v25, %v954_v40  ;;  %v960_v6 = vsub.f32 %v2148_v15, %v954_v40 }
 0x167   :  { %1595 = vpow2.f32 %v479_v59  ;;  %v2206_v54 = vpop.eup %1571  ;;  %v127_v18 = vsel %vm95_vm0, %v126_v37, %v2181_v36  ;;  %v129_v56 = vsel %vm95_vm0, %v128_v39, %v2194_v26  ;;  %v957_v9 = vsub.f32 %v2134_v11, %v2188_v28 }
 0x168   :  { %1597 = vpow2.f32 %v840_v32  ;;  %v2213_v23 = vpop.eup %1573  ;;  %v958_v25 = vsub.f32 %v2141_v41, %v2188_v28  ;;  %v132_v10 = vsel %vm100_vm1, %v127_v18, 0.0  ;;  %v133_v15 = vsel %vm100_vm1, %v129_v56, 0.0 }
 0x169   :  { %1599 = vpow2.f32 %v844_v3  ;;  %v2220_v19 = vpop.eup %1575  ;;  %v247_v34 = vrot.slane %v2203_v53, 7  ;;  %v249_v55 = vrot.slane %v2206_v54, 7  ;;  %v965_v43 = vmul.f32 1.442695, %v959_v47 }
 0x16a   :  { %1601 = vpow2.f32 %v846_v63  ;;  %v2225_v5 = vpop.eup %1577  ;;  %v134_v58 = vadd.f32 %v133_v15, %v132_v10  ;;  %v368_v11 = vrot.slane %v2220_v19, 7  ;;  %v967_v41 = vmul.f32 1.442695, %v960_v6 }
 0x16b   :  { %1603 = vpow2.f32 %v842_v24  ;;  %v2228_v60 = vpop.eup %1579  ;;  %v248_v14 = vsel %vm95_vm0, %v247_v34, %v2199_v13  ;;  %v250_v1 = vsel %vm95_vm0, %v249_v55, %v2213_v23  ;;  %v370_v52 = vrot.slane %v2225_v5, 7 }
 0x16c   :  { %v2235_v12 = vpop.eup %1581  ;;  %1605 = vpow2.f32 %v723_v4  ;;  %135 = vadd.xlane.f32.xlu1 %v134_v58  ;;  %v253_v2 = vsel %vm100_vm1, %v248_v14, 0.0  ;;  %v254_v62 = vsel %vm100_vm1, %v250_v1, 0.0  ;;  %v369_v46 = vsel %vm95_vm0, %v368_v11, %v2196_v0 }
 0x16d   :  { %1607 = vpow2.f32 %v725_v42  ;;  %v255_v22 = vadd.f32 %v254_v62, %v253_v2  ;;  %v371_v50 = vsel %vm95_vm0, %v370_v52, %v2228_v60  ;;  %v374_v29 = vsel %vm100_vm1, %v369_v46, 0.0 }
 0x16e   :  { %v2241_v21 = vpop.eup %1583  ;;  %1609 = vpow2.f32 %v719_v45  ;;  %v961_v30 = vmul.f32 1.442695, %v957_v9  ;;  %v375_v61 = vsel %vm100_vm1, %v371_v50, 0.0  ;;  %v963_v48 = vmul.f32 1.442695, %v958_v25 }
 0x16f   :  { %v2246_v7 = vpop.eup %1585  ;;  %v610_v35 = vrot.slane %v2241_v21, 7  ;;  %1611 = vpow2.f32 %v721_v8  ;;  %256 = vadd.xlane.f32.xlu0 %v255_v22  ;;  %v376_v31 = vadd.f32 %v375_v61, %v374_v29 }
 0x170   :  { %v2250_v20 = vpop.eup %1587  ;;  %v612_v51 = vrot.slane %v2246_v7, 7  ;;  %1613 = vpow2.f32 %v965_v43 }
 0x171   :  { %v2253_v17 = vpop.eup %1589  ;;  %v611_v16 = vsel %vm95_vm0, %v610_v35, %v2235_v12  ;;  %1615 = vpow2.f32 %v967_v41  ;;  %377 = vadd.xlane.f32.xlu1 %v376_v31 }
 0x172   :  { %v2257_v27 = vpop.eup %1591  ;;  %v613_v49 = vsel %vm95_vm0, %v612_v51, %v2250_v20  ;;  %v616_v28 = vsel %vm100_vm1, %v611_v16, 0.0  ;;  %1617 = vpow2.f32 %v961_v30 }
 0x173   :  { %v2262_v59 = vpop.eup %1593  ;;  %v617_v57 = vsel %vm100_vm1, %v613_v49, 0.0  ;;  %v489_v44 = vrot.slane %v2257_v27, 7  ;;  %1619 = vpow2.f32 %v963_v48 }
 0x174   :  { %v2266_v32 = vpop.eup %1595  ;;  %v618_v24 = vadd.f32 %v617_v57, %v616_v28  ;;  %v491_v45 = vrot.slane %v2262_v59, 7 }
 0x175   :  { %v2269_v3 = vpop.eup %1597  ;;  %v490_v8 = vsel %vm95_vm0, %v489_v44, %v2253_v17 }
 0x176   :  { %v2273_v40 = vpop.eup %1599  ;;  %619 = vadd.xlane.f32.xlu1 %v618_v24  ;;  %v492_v63 = vsel %vm95_vm0, %v491_v45, %v2266_v32  ;;  %v495_v37 = vsel %vm100_vm1, %v490_v8, 0.0  ;;  %v147_v45 = vlaneseq }
 0x177   :  { %v2278_v39 = vpop.eup %1601  ;;  %v496_v4 = vsel %vm100_vm1, %v492_v63, 0.0  ;;  %v852_v42 = vrot.slane %v2273_v40, 7 }
 0x178   :  { %v2282_v47 = vpop.eup %1603  ;;  %v497_v6 = vadd.f32 %v496_v4, %v495_v37  ;;  %v854_v18 = vrot.slane %v2278_v39, 7  ;;  %v2324_v37 = vshrl.u32 %v147_v45, 7 }
 0x179   :  { %v853_v56 = vsel %vm95_vm0, %v852_v42, %v2269_v3  ;;  %v2287_v9 = vpop.eup %1605 }
 0x17a   :  { %498 = vadd.xlane.f32.xlu0 %v497_v6  ;;  %v855_v25 = vsel %vm95_vm0, %v854_v18, %v2282_v47  ;;  %v858_v10 = vsel %vm100_vm1, %v853_v56, 0.0  ;;  %v2292_v15 = vpop.eup %1607  ;;  %v731_v55 = vrot.slane %v2287_v9, 7  ;;  %v2327_v6 = vsub.s32 0, %v2324_v37 }
 0x17b   :  { %v859_v34 = vsel %vm100_vm1, %v855_v25, 0.0  ;;  %v2296_v43 = vpop.eup %1609  ;;  %v733_v11 = vrot.slane %v2292_v15, 7 }
 0x17c   :  { %v860_v58 = vadd.f32 %v859_v34, %v858_v10  ;;  %v2299_v41 = vpop.eup %1611  ;;  %v732_v14 = vsel %vm95_vm0, %v731_v55, %v2296_v43 }
 0x17d   :  { %v2303_v1 = vpop.eup %1613  ;;  %v734_v52 = vsel %vm95_vm0, %v733_v11, %v2299_v41  ;;  %v737_v2 = vsel %vm100_vm1, %v732_v14, 0.0 }
 0x17e   :  { %861 = vadd.xlane.f32.xlu1 %v860_v58  ;;  %v2308_v62 = vpop.eup %1615  ;;  %v738_v46 = vsel %vm100_vm1, %v734_v52, 0.0  ;;  %v973_v22 = vrot.slane %v2303_v1, 7 }
 0x17f   :  { %v2312_v50 = vpop.eup %1617  ;;  %v739_v29 = vadd.f32 %v738_v46, %v737_v2  ;;  %v975_v30 = vrot.slane %v2308_v62, 7 }
 0x180   :  { %v2315_v61 = vpop.eup %1619  ;;  %v974_v35 = vsel %vm95_vm0, %v973_v22, %v2312_v50 }
 0x181   :  { %740 = vadd.xlane.f32.xlu0 %v739_v29  ;;  %v976_v48 = vsel %vm95_vm0, %v975_v30, %v2315_v61  ;;  %v979_v31 = vsel %vm100_vm1, %v974_v35, 0.0  ;;  %v1656_v35 = vld [vmem:[#allocation2 + $0x8] sm:$0xff] }
 0x182   :  { %v980_v51 = vsel %vm100_vm1, %v976_v48, 0.0 }
 0x183   :  { %v981_v16 = vadd.f32 %v980_v51, %v979_v31 }
 0x185   :  { %982 = vadd.xlane.f32.xlu0 %v981_v16 }
 0x1f5   :  { %v136_v49 = vpop.xlane.xlu1 %135 }
 0x1f6   :  { %v138_v28 = vrot.slane %v136_v49, 1  ;;  %1621 = vrcp.f32 %v136_v49 }
 0x1f8   :  { %1623 = vrcp.f32 %v138_v28  ;;  %v257_v57 = vpop.xlane.xlu0 %256 }
 0x1f9   :  { %v259_v44 = vrot.slane %v257_v57, 1  ;;  %1625 = vrcp.f32 %v257_v57  ;;  %v1657_v57 = vld [vmem:[#allocation2 + $0x80] sm:$0xff] }
 0x1fa   :  { %v378_v24 = vpop.xlane.xlu1 %377 }
 0x1fb   :  { %v380_v8 = vrot.slane %v378_v24, 1  ;;  %1627 = vrcp.f32 %v378_v24  ;;  %v1658_v24 = vld [vmem:[#allocation2 + $0x88] sm:$0xff] }
 0x1fc   :  { %1629 = vrcp.f32 %v259_v44 }
 0x1fd   :  { %1631 = vrcp.f32 %v380_v8 }
 0x1ff   :  { %v620_v63 = vpop.xlane.xlu1 %619 }
 0x200   :  { %v622_v4 = vrot.slane %v620_v63, 1  ;;  %1633 = vrcp.f32 %v620_v63 }
 0x203   :  { %v499_v42 = vpop.xlane.xlu0 %498  ;;  %v1622_v18 = vpop.eup %1621 }
 0x204   :  { %v501_v56 = vrot.slane %v499_v42, 1  ;;  %1635 = vrcp.f32 %v499_v42  ;;  %v142_v25 = vmul.f32 %v1622_v18, %v2181_v36  ;;  %v143_v10 = vmul.f32 %v1622_v18, %v2194_v26  ;;  %v1655_v26 = vld [vmem:[#allocation2] sm:$0xff]  ;;  %v1659_v42 = vld [vmem:[#allocation2 + $0x10] sm:$0xff] }
 0x205   :  { %1637 = vrcp.f32 %v622_v4  ;;  %v1624_v34 = vpop.eup %1623 }
 0x206   :  { %1639 = vrcp.f32 %v501_v56  ;;  %v1626_v55 = vpop.eup %1625  ;;  %v150_v11 = vrot.slane %v142_v25, %v2327_v6  ;;  %v154_v14 = vrot.slane %v143_v10, %v2327_v6  ;;  %v145_v52 = vmul.f32 %v1624_v34, %v2184_v33  ;;  %v1660_v56 = vld [vmem:[#allocation2 + $0x18] sm:$0xff] }
 0x207   :  { %v862_v58 = vpop.xlane.xlu1 %861  ;;  %v146_v2 = vmul.f32 %v1624_v34, %v2190_v38  ;;  %v263_v22 = vmul.f32 %v1626_v55, %v2199_v13  ;;  %v264_v36 = vmul.f32 %v1626_v55, %v2213_v23 }
 0x208   :  { %v864_v46 = vrot.slane %v862_v58, 1  ;;  %1641 = vrcp.f32 %v862_v58  ;;  %v1628_v29 = vpop.eup %1627  ;;  %v163_v30 = vmul.f32 %v1655_v26, %v150_v11  ;;  %v164_v48 = vmul.f32 %v1656_v35, %v154_v14 }
 0x209   :  { %v158_v31 = vrot.slane %v145_v52, %v2327_v6  ;;  %v162_v51 = vrot.slane %v146_v2, %v2327_v6  ;;  %v1630_v16 = vpop.eup %1629  ;;  %v271_v33 = vrot.slane %v263_v22, %v2327_v6  ;;  %v275_v38 = vrot.slane %v264_v36, %v2327_v6 }
 0x20a   :  { %1643 = vrcp.f32 %v864_v46  ;;  %v384_v49 = vmul.f32 %v1628_v29, %v2196_v0  ;;  %v1632_v13 = vpop.eup %1631  ;;  %v741_v28 = vpop.xlane.xlu0 %740  ;;  %v167_v23 = vadd.f32 %v164_v48, %v163_v30  ;;  %v266_v63 = vmul.f32 %v1630_v16, %v2203_v53  ;;  %v1661_v46 = vld [vmem:[#allocation2 + $0x90] sm:$0xff]  ;;  %v1663_v48 = vld [vmem:[#allocation2 + $0x98] sm:$0xff] }
 0x20b   :  { %v165_v44 = vmul.f32 %v1657_v57, %v158_v31  ;;  %v166_v8 = vmul.f32 %v1658_v24, %v162_v51  ;;  %v743_v4 = vrot.slane %v741_v28, 1  ;;  %1645 = vrcp.f32 %v741_v28  ;;  %v1664_v31 = vld [vmem:[#allocation2 + $0x28] sm:$0xff] }
 0x20c   :  { %v284_v18 = vmul.f32 %v1659_v42, %v271_v33  ;;  %v285_v25 = vmul.f32 %v1660_v56, %v275_v38  ;;  %168 = vadd.xlane.f32.xlu1 %v167_v23  ;;  %v267_v34 = vmul.f32 %v1630_v16, %v2206_v54  ;;  %v279_v0 = vrot.slane %v266_v63, %v2327_v6  ;;  %v1666_v24 = vld [vmem:[#allocation2 + $0xa8] sm:$0xff] }
 0x20d   :  { %v170_v10 = vadd.f32 %v166_v8, %v165_v44  ;;  %v385_v55 = vmul.f32 %v1628_v29, %v2228_v60  ;;  %v1634_v58 = vpop.eup %1633  ;;  %1647 = vrcp.f32 %v743_v4  ;;  %v392_v14 = vrot.slane %v384_v49, %v2327_v6  ;;  %v1662_v60 = vld [vmem:[#allocation2 + $0x20] sm:$0xff] }
 0x20e   :  { %v288_v11 = vadd.f32 %v285_v25, %v284_v18  ;;  %v387_v53 = vmul.f32 %v1632_v13, %v2220_v19  ;;  %v983_v52 = vpop.xlane.xlu0 %982  ;;  %v283_v2 = vrot.slane %v267_v34, %v2327_v6  ;;  %v286_v22 = vmul.f32 %v1661_v46, %v279_v0  ;;  %v1665_v49 = vld [vmem:[#allocation2 + $0xa0] sm:$0xff]  ;;  %v1668_v0 = vld [vmem:[#allocation2 + $0x38] sm:$0xff] }
 0x20f   :  { %171 = vadd.xlane.f32.xlu0 %v170_v10  ;;  %v396_v36 = vrot.slane %v385_v55, %v2327_v6  ;;  %v388_v54 = vmul.f32 %v1632_v13, %v2225_v5  ;;  %v985_v26 = vrot.slane %v983_v52, 1  ;;  %1649 = vrcp.f32 %v983_v52  ;;  %v1667_v10 = vld [vmem:[#allocation2 + $0x30] sm:$0xff] }
 0x210   :  { %v405_v29 = vmul.f32 %v1662_v60, %v392_v14  ;;  %v400_v30 = vrot.slane %v387_v53, %v2327_v6  ;;  %289 = vadd.xlane.f32.xlu1 %v288_v11  ;;  %v287_v19 = vmul.f32 %v1663_v48, %v283_v2  ;;  %v626_v33 = vmul.f32 %v1634_v58, %v2235_v12 }
 0x211   :  { %v1636_v35 = vpop.eup %1635  ;;  %v406_v51 = vmul.f32 %v1664_v31, %v396_v36  ;;  %v404_v16 = vrot.slane %v388_v54, %v2327_v6  ;;  %1651 = vrcp.f32 %v985_v26  ;;  %v627_v63 = vmul.f32 %v1634_v58, %v2250_v20  ;;  %v1672_v54 = vld [vmem:[#allocation2 + $0xb8] sm:$0xff] }
 0x212   :  { %v1638_v38 = vpop.eup %1637  ;;  %v407_v5 = vmul.f32 %v1665_v49, %v400_v30  ;;  %v505_v13 = vmul.f32 %v1636_v35, %v2253_v17  ;;  %v506_v28 = vmul.f32 %v1636_v35, %v2266_v32  ;;  %v291_v57 = vadd.f32 %v287_v19, %v286_v22  ;;  %v1671_v22 = vld [vmem:[#allocation2 + $0xb0] sm:$0xff] }
 0x213   :  { %v1640_v23 = vpop.eup %1639  ;;  %v409_v44 = vadd.f32 %v406_v51, %v405_v29  ;;  %v408_v8 = vmul.f32 %v1666_v24, %v404_v16  ;;  %v634_v32 = vrot.slane %v626_v33, %v2327_v6  ;;  %v638_v25 = vrot.slane %v627_v63, %v2327_v6  ;;  %v1673_v33 = vld [vmem:[#allocation2 + $0xc0] sm:$0xff]  ;;  %v1676_v63 = vld [vmem:[#allocation2 + $0x50] sm:$0xff] }
 0x214   :  { %v513_v4 = vrot.slane %v505_v13, %v2327_v6  ;;  %v517_v42 = vrot.slane %v506_v28, %v2327_v6  ;;  %v508_v12 = vmul.f32 %v1640_v23, %v2257_v27  ;;  %v509_v18 = vmul.f32 %v1640_v23, %v2262_v59  ;;  %292 = vadd.xlane.f32.xlu0 %v291_v57  ;;  %v1669_v27 = vld [vmem:[#allocation2 + $0x40] sm:$0xff]  ;;  %v1670_v59 = vld [vmem:[#allocation2 + $0x48] sm:$0xff] }
 0x215   :  { %v1642_v56 = vpop.eup %1641  ;;  %410 = vadd.xlane.f32.xlu1 %v409_v44  ;;  %v412_v17 = vadd.f32 %v408_v8, %v407_v5  ;;  %v647_v14 = vmul.f32 %v1669_v27, %v634_v32  ;;  %v648_v53 = vmul.f32 %v1670_v59, %v638_v25  ;;  %v629_v52 = vmul.f32 %v1638_v38, %v2241_v21  ;;  %v1675_v44 = vld [vmem:[#allocation2 + $0x60] sm:$0xff] }
 0x216   :  { %v526_v34 = vmul.f32 %v1667_v10, %v513_v4  ;;  %v527_v20 = vmul.f32 %v1668_v0, %v517_v42  ;;  %v521_v55 = vrot.slane %v508_v12, %v2327_v6  ;;  %v525_v58 = vrot.slane %v509_v18, %v2327_v6  ;;  %v1677_v42 = vld [vmem:[#allocation2 + $0x58] sm:$0xff] }
 0x217   :  { %v1644_v11 = vpop.eup %1643  ;;  %v630_v2 = vmul.f32 %v1638_v38, %v2246_v7  ;;  %v868_v60 = vmul.f32 %v1642_v56, %v2269_v3  ;;  %v651_v30 = vadd.f32 %v648_v53, %v647_v14  ;;  %v642_v35 = vrot.slane %v629_v52, %v2327_v6  ;;  %v1674_v38 = vld [vmem:[#allocation2 + $0xc8] sm:$0xff]  ;;  %v1680_v0 = vld [vmem:[#allocation2 + $0xd8] sm:$0xff]  ;;  %v1681_v53 = vld [vmem:[#allocation2 + $0xe0] sm:$0xff] }
 0x218   :  { %v530_v46 = vadd.f32 %v527_v20, %v526_v34  ;;  %v528_v36 = vmul.f32 %v1671_v22, %v521_v55  ;;  %v529_v26 = vmul.f32 %v1672_v54, %v525_v58  ;;  %v1646_v29 = vpop.eup %1645  ;;  %413 = vadd.xlane.f32.xlu0 %v412_v17  ;;  %v869_v19 = vmul.f32 %v1642_v56, %v2282_v47  ;;  %v1682_v52 = vld [vmem:[#allocation2 + $0xe8] sm:$0xff]  ;;  %v2395_v54 = vld [vmem:[#allocation2 + $0x78] sm:$0xff] }
 0x219   :  { %v646_v48 = vrot.slane %v630_v2, %v2327_v6  ;;  %v747_v7 = vmul.f32 %v1646_v29, %v2296_v43  ;;  %v748_v31 = vmul.f32 %v1646_v29, %v2299_v41  ;;  %v876_v51 = vrot.slane %v868_v60, %v2327_v6  ;;  %v2399_v60 = vld [vmem:[#allocation2 + $0xf0] sm:$0xff] }
 0x21a   :  { %531 = vadd.xlane.f32.xlu1 %v530_v46  ;;  %v533_v21 = vadd.f32 %v529_v26, %v528_v36  ;;  %v1648_v16 = vpop.eup %1647  ;;  %v649_v3 = vmul.f32 %v1673_v33, %v642_v35  ;;  %v880_v5 = vrot.slane %v869_v19, %v2327_v6  ;;  %v871_v13 = vmul.f32 %v1644_v11, %v2273_v40  ;;  %v2392_v36 = vld [vmem:[#allocation2 + $0x70] sm:$0xff]  ;;  %v1691_v33 = vld [vmem:[%s2477_s1 + $0x18] sm:$0xff] }
 0x21b   :  { %v650_v49 = vmul.f32 %v1674_v38, %v646_v48  ;;  %v755_v28 = vrot.slane %v747_v7, %v2327_v6  ;;  %v759_v47 = vrot.slane %v748_v31, %v2327_v6  ;;  %v750_v23 = vmul.f32 %v1648_v16, %v2287_v9  ;;  %v1678_v9 = vld [vmem:[#allocation2 + $0x68] sm:$0xff]  ;;  %v1687_v7 = vld [vmem:[%s2477_s1 + $0x38] sm:$0xff]  ;;  %v1688_v31 = vld [vmem:[%s2477_s1 + $0x30] sm:$0xff] }
 0x21c   :  { %v751_v43 = vmul.f32 %v1648_v16, %v2292_v15  ;;  %v1650_v41 = vpop.eup %1649  ;;  %534 = vadd.xlane.f32.xlu0 %v533_v21  ;;  %v889_v24 = vmul.f32 %v1675_v44, %v876_v51  ;;  %v872_v8 = vmul.f32 %v1644_v11, %v2278_v39  ;;  %v890_v17 = vmul.f32 %v1678_v9, %v880_v5  ;;  %v1679_v39 = vld [vmem:[#allocation2 + $0xd0] sm:$0xff]  ;;  %v1689_v51 = vld [vmem:[%s2477_s1 + $0x28] sm:$0xff]  ;;  %v1690_v16 = vld [vmem:[%s2477_s1 + $0x20] sm:$0xff] }
 0x21d   :  { %v654_v57 = vadd.f32 %v650_v49, %v649_v3  ;;  %v768_v4 = vmul.f32 %v1676_v63, %v755_v28  ;;  %v769_v40 = vmul.f32 %v1677_v42, %v759_v47  ;;  %v763_v12 = vrot.slane %v750_v23, %v2327_v6  ;;  %v1692_v3 = vld [vmem:[%s2477_s1 + $0x10] sm:$0xff]  ;;  %v1693_v38 = vld [vmem:[%s2477_s1 + $0x8] sm:$0xff]  ;;  %v1694_v49 = vld [vmem:[%s2477_s1] sm:$0xff] }
 0x21e   :  { %652 = vadd.xlane.f32.xlu1 %v651_v30  ;;  %v767_v18 = vrot.slane %v751_v43, %v2327_v6  ;;  %v1652_v56 = vpop.eup %1651  ;;  %v884_v15 = vrot.slane %v871_v13, %v2327_v6  ;;  %v888_v32 = vrot.slane %v872_v8, %v2327_v6  ;;  %v989_v25 = vmul.f32 %v1650_v41, %v2312_v50  ;;  %v2402_v30 = vld [vmem:[#allocation2 + $0xf8] sm:$0xff] }
 0x21f   :  { %v772_v10 = vadd.f32 %v769_v40, %v768_v4  ;;  %v770_v34 = vmul.f32 %v1679_v39, %v763_v12  ;;  %v990_v55 = vmul.f32 %v1650_v41, %v2315_v61  ;;  %v992_v11 = vmul.f32 %v1652_v56, %v2303_v1 }
 0x220   :  { %v771_v20 = vmul.f32 %v1680_v0, %v767_v18  ;;  %655 = vadd.xlane.f32.xlu0 %v654_v57  ;;  %v997_v58 = vrot.slane %v989_v25, %v2327_v6  ;;  %v993_v14 = vmul.f32 %v1652_v56, %v2308_v62  ;;  %v891_v50 = vmul.f32 %v1681_v53, %v884_v15 }
 0x221   :  { %v1001_v27 = vrot.slane %v990_v55, %v2327_v6  ;;  %v892_v2 = vmul.f32 %v1682_v52, %v888_v32  ;;  %v1005_v46 = vrot.slane %v992_v11, %v2327_v6  ;;  %v893_v22 = vadd.f32 %v890_v17, %v889_v24 }
 0x222   :  { %773 = vadd.xlane.f32.xlu1 %v772_v10  ;;  %v775_v59 = vadd.f32 %v771_v20, %v770_v34  ;;  %v1010_v61 = vmul.f32 %v2392_v36, %v997_v58  ;;  %v1009_v26 = vrot.slane %v993_v14, %v2327_v6  ;;  %v1743_v21 = vmov 0.0  }
 0x223   :  { %v1011_v1 = vmul.f32 %v2395_v54, %v1001_v27  ;;  %v896_v62 = vadd.f32 %v892_v2, %v891_v50  ;;  %v1012_v29 = vmul.f32 %v2399_v60, %v1005_v46  ;;  %1522 = vmatprep.subr.mxu0 %v1743_v21  ;;  %1541 = vmatprep.subr.mxu1 %v1743_v21  ;;  %v1023_v57 = vand.u32 127, %v147_v45 }
 0x224   :  { %776 = vadd.xlane.f32.xlu0 %v775_v59  ;;  %v1013_v35 = vmul.f32 %v2402_v30, %v1009_v26  ;;  %1523 = vmatpush3.msra.mxu0 %v1687_v7 }
 0x225   :  { %v1014_v48 = vadd.f32 %v1011_v1, %v1010_v61  ;;  %1524 = vmatprep.subr.mxu0 %v1743_v21  ;;  %1538 = vmatprep.mubr.msk.f32.mxu0 %vm1744_vm2, %v1743_v21  ;;  %v1036_v24 = vadd.s32 4294967288, %v1023_v57  ;;  %v1049_v63 = vadd.s32 4294967280, %v1023_v57  ;;  %v1062_v4 = vadd.s32 4294967272, %v1023_v57 }
 0x226   :  { %894 = vadd.xlane.f32.xlu1 %v893_v22  ;;  %v1017_v19 = vadd.f32 %v1013_v35, %v1012_v29  ;;  %1525 = vmatpush3.msra.mxu0 %v1688_v31  ;;  %v1075_v42 = vadd.s32 4294967264, %v1023_v57  ;;  %v1088_v18 = vadd.s32 4294967256, %v1023_v57  ;;  %v1101_v17 = vadd.s32 4294967248, %v1023_v57 }
 0x227   :  { %1526 = vmatprep.subr.mxu0 %v1743_v21  ;;  %1543 = vmatprep.mubr.msk.f32.mxu1 %vm1744_vm2, %v1743_v21  ;;  %v1039_v12 = vsub.s32 %v1036_v24, %v2324_v37  ;;  %v1052_v9 = vsub.s32 %v1049_v63, %v2324_v37  ;;  %v1026_v15 = vsub.s32 %v1023_v57, %v2324_v37  ;;  %v1114_v34 = vadd.s32 4294967240, %v1023_v57 }
 0x228   :  { %897 = vadd.xlane.f32.xlu0 %v896_v62  ;;  %1527 = vmatpush3.msra.mxu0 %v1689_v51  ;;  %v1065_v25 = vsub.s32 %v1062_v4, %v2324_v37  ;;  %v1078_v10 = vsub.s32 %v1075_v42, %v2324_v37  ;;  %v1091_v58 = vsub.s32 %v1088_v18, %v2324_v37 }
 0x229   :  { %1528 = vmatprep.subr.mxu0 %v1743_v21  ;;  %v1104_v59 = vsub.s32 %v1101_v17, %v2324_v37  ;;  %v1117_v1 = vsub.s32 %v1114_v34, %v2324_v37  ;;  %v1508_v34 = vld [vmem:[%s2478_s2 + $0x4] ss:$0 sm:$0xff] }
 0x22a   :  { %1015 = vadd.xlane.f32.xlu1 %v1014_v48  ;;  %1529 = vmatpush3.msra.mxu0 %v1690_v16 }
 0x22b   :  { %1530 = vmatprep.subr.mxu0 %v1743_v21 }
 0x22c   :  { %1018 = vadd.xlane.f32.xlu0 %v1017_v19  ;;  %1531 = vmatpush3.msra.mxu0 %v1691_v33 }
 0x22d   :  { %1532 = vmatprep.subr.mxu0 %v1743_v21 }
 0x22e   :  { %1533 = vmatpush3.msra.mxu0 %v1692_v3 }
 0x22f   :  { %1534 = vmatprep.subr.mxu0 %v1743_v21 }
 0x230   :  { %1535 = vmatpush3.msra.mxu0 %v1693_v38 }
 0x231   :  { %1536 = vmatprep.subr.mxu0 %v1743_v21 }
 0x232   :  { %1537 = vmatpush3.msra.mxu0 %v1694_v49 }
 0x295   :  { %v169_v5 = vpop.xlane.xlu1 %168 }
 0x296   :  { %v1027_v53 = vrot.slane %v169_v5, %v1026_v15 }
 0x298   :  { %v172_v13 = vpop.xlane.xlu0 %171 }
 0x299   :  { %v290_v28 = vpop.xlane.xlu1 %289  ;;  %v1031_v0 = vrot.slane %v172_v13, %v1026_v15  ;;  %v1506_v15 = vld [vmem:[%s2479_s3 + $0x1] ss:$0 sm:$0xff] }
 0x29a   :  { %v1040_v20 = vrot.slane %v290_v28, %v1039_v12 }
 0x29b   :  { %v1032_v26 = vsel %vm95_vm0, %v1031_v0, %v1027_v53  ;;  %v1326_v53 = vld [vmem:[#allocation2 + $0x8] sm:$0xff] }
 0x29d   :  { %v293_v47 = vpop.xlane.xlu0 %292 }
 0x29e   :  { %v411_v23 = vpop.xlane.xlu1 %410  ;;  %v1044_v32 = vrot.slane %v293_v47, %v1039_v12  ;;  %v40_v12 = vld [vmem:[%s2478_s2] sm:$0xf]  ;;  %s1745_s2 = smov [#allocation5]  }
 0x29f   :  { %v1053_v27 = vrot.slane %v411_v23, %v1052_v9  ;;  %1542 = vmatpush3.msk.msra.mxu1 %vm1251_vm12, %v40_v12 }
 0x2a0   :  { %v1045_v50 = vsel %vm95_vm0, %v1044_v32, %v1040_v20 }
 0x2a1   :  { %v414_v43 = vpop.xlane.xlu0 %413  ;;  %v1126_v48 = vsel %vm1125_vm3, %v1032_v26, %v1045_v50  ;;  %v1329_v26 = vld [vmem:[#allocation2 + $0x20] sm:$0xff] }
 0x2a2   :  { %v1057_v45 = vrot.slane %v414_v43, %v1052_v9  ;;  %v1504_v43 = vld [vmem:[%s2479_s3] ss:$0 sm:$0xff] }
 0x2a3   :  { %v532_v41 = vpop.xlane.xlu1 %531 }
 0x2a4   :  { %v1066_v52 = vrot.slane %v532_v41, %v1065_v25  ;;  %v1058_v46 = vsel %vm95_vm0, %v1057_v45, %v1053_v27 }
 0x2a5   :  { %v535_v44 = vpop.xlane.xlu0 %534  ;;  %v1128_v31 = vsel %vm1127_vm4, %v1126_v48, %v1058_v46 }
 0x2a6   :  { %v1070_v55 = vrot.slane %v535_v44, %v1065_v25  ;;  %v1507_v25 = vld [vmem:[%s2479_s3 + $0x2] ss:$0 sm:$0xff]  ;;  %s1492_s3 = sshll.u32 %s1745_s2, 4  ;;  %s1493_s3 = int_to_ptr.vmem [resolvable:$true] %s1492_s3 }
 0x2a7   :  { %v653_v8 = vpop.xlane.xlu1 %652  ;;  %s1715_s14 = scalar_lea.vmem %s1493_s3, 4096  ;;  %p1720_p6 = scmp.lt.s32.totalorder %s1493_s3, %s1493_s3 }
 0x2a8   :  { %v1079_v22 = vrot.slane %v653_v8, %v1078_v10  ;;  %v1071_v62 = vsel %vm95_vm0, %v1070_v55, %v1066_v52  ;;  %p1716_p5 = scmp.ne.s32.totalorder %s1493_s3, %s1715_s14  ;;  %p1721_p7 = scmp.lt.s32.totalorder %s1715_s14, %s1715_s14 }
 0x2a9   :  { %v656_v40 = vpop.xlane.xlu0 %655  ;;  %v1130_v16 = vsel %vm1129_vm5, %v1128_v31, %v1071_v62  ;;  %v1330_v62 = vld [vmem:[#allocation2 + $0x28] sm:$0xff]  ;;  %v1337_v31 = vld [vmem:[#allocation2 + $0x60] sm:$0xff] }
 0x2aa   :  { %v1083_v14 = vrot.slane %v656_v40, %v1078_v10  ;;  %p1722_p8 = por %p1721_p7, %p1720_p6 }
 0x2ab   :  { %v774_v56 = vpop.xlane.xlu1 %773 }
 0x2ac   :  { %v1092_v29 = vrot.slane %v774_v56, %v1091_v58  ;;  %v1084_v19 = vsel %vm95_vm0, %v1083_v14, %v1079_v22  ;;  %v1328_v14 = vld [vmem:[#allocation2 + $0x18] sm:$0xff]  ;;  %p1723_p9 = pnand %p1722_p8, %p1716_p5 }
 0x2ad   :  { %v777_v39 = vpop.xlane.xlu0 %776  ;;  %v1132_v38 = vsel %vm1131_vm6, %v1130_v16, %v1084_v19  ;;  %v1331_v16 = vld [vmem:[#allocation2 + $0x30] sm:$0xff] }
 0x2ae   :  { %v1096_v2 = vrot.slane %v777_v39, %v1091_v58 }
 0x2af   :  { %v895_v11 = vpop.xlane.xlu1 %894 }
 0x2b0   :  { %v1105_v21 = vrot.slane %v895_v11, %v1104_v59  ;;  %v1097_v51 = vsel %vm95_vm0, %v1096_v2, %v1092_v29  ;;  %v1390_v11 = vsub.s32 1, %v2324_v37 }
 0x2b1   :  { %v898_v61 = vpop.xlane.xlu0 %897  ;;  %v1134_v13 = vsel %vm1133_vm7, %v1132_v38, %v1097_v51  ;;  %v1338_v51 = vld [vmem:[#allocation2 + $0x68] sm:$0xff] }
 0x2b2   :  { %v1109_v35 = vrot.slane %v898_v61, %v1104_v59  ;;  %v1325_v59 = vld [vmem:[#allocation2] sm:$0xff] }
 0x2b3   :  { %v1016_v7 = vpop.xlane.xlu1 %1015  ;;  %v1333_v61 = vld [vmem:[#allocation2 + $0x40] sm:$0xff] }
 0x2b4   :  { %v1110_v33 = vsel %vm95_vm0, %v1109_v35, %v1105_v21  ;;  %v1118_v49 = vrot.slane %v1016_v7, %v1117_v1 }
 0x2b5   :  { %v1019_v3 = vpop.xlane.xlu0 %1018  ;;  %v1136_v47 = vsel %vm1135_vm8, %v1134_v13, %v1110_v33  ;;  %v1332_v33 = vld [vmem:[#allocation2 + $0x38] sm:$0xff] }
 0x2b6   :  { %v1122_v5 = vrot.slane %v1019_v3, %v1117_v1  ;;  %v1334_v1 = vld [vmem:[#allocation2 + $0x48] sm:$0xff] }
 0x2b8   :  { %v1123_v28 = vsel %vm95_vm0, %v1122_v5, %v1118_v49 }
 0x2b9   :  { %v1138_v23 = vsel %vm1137_vm9, %v1136_v47, %v1123_v28  ;;  %v1339_v47 = vld [vmem:[#allocation2 + $0x80] sm:$0xff] }
 0x2ba   :  { %1539 = vmatmul.mubr.msk.f32.vlgmr.msra.gmra.mxu0 %vm1143_vm10, %v1138_v23  ;;  %v1340_v23 = vld [vmem:[#allocation2 + $0x88] sm:$0xff] }
 0x37a   :  { %v1213_v41 = vpop.f32.mrf.mxu0 }
 0x37b   :  { %v1214_v57 = vadd.f32 %v1504_v43, %v1213_v41  ;;  %v1335_v43 = vld [vmem:[#allocation2 + $0x50] sm:$0xff]  ;;  %v1336_v41 = vld [vmem:[#allocation2 + $0x58] sm:$0xff] }
 0x37c   :  { %v1540_v44 = vpop.f32.mrf.mxu0 }
 0x37d   :  { %v1218_v24 = vsel %vm1217_vm11, %v1214_v57, 0.0 }
 0x37e   :  { %1219 = vadd.xlane.f32.xlu1 %v1218_v24 }
 0x407   :  { %v1220_v8 = vpop.xlane.xlu1 %1219 }
 0x408   :  { %v1222_v63 = vmul.f32 0.25, %v1220_v8 }
 0x40a   :  { %v1223_v4 = vsub.f32 %v1214_v57, %v1222_v63 }
 0x40c   :  { %v1224_v42 = vmul.f32 %v1223_v4, %v1223_v4 }
 0x40e   :  { %v1225_v40 = vsel %vm1217_vm11, %v1224_v42, 0.0  ;;  %v1343_v42 = vld [vmem:[#allocation2 + $0xa0] sm:$0xff] }
 0x40f   :  { %1226 = vadd.xlane.f32.xlu0 %v1225_v40  ;;  %v1344_v40 = vld [vmem:[#allocation2 + $0xa8] sm:$0xff] }
 0x498   :  { %v1227_v18 = vpop.xlane.xlu0 %1226 }
 0x499   :  { %v1228_v56 = vmul.f32 0.25, %v1227_v18 }
 0x49b   :  { %v1229_v9 = vadd.f32 1e-05, %v1228_v56 }
 0x49d   :  { %1653 = vrsqrt.f32 %v1229_v9 }
 0x4aa   :  { %v1654_v17 = vpop.eup %1653 }
 0x4ab   :  { %v1231_v32 = vmul.f32 %v1654_v17, %v1223_v4 }
 0x4ad   :  { %v1236_v45 = vmul.f32 %v1506_v15, %v1231_v32  ;;  %v1347_v32 = vld [vmem:[#allocation2 + $0xc0] sm:$0xff] }
 0x4af   :  { %v1241_v10 = vadd.f32 %v1507_v25, %v1236_v45  ;;  %v1348_v25 = vld [vmem:[#allocation2 + $0xc8] sm:$0xff]  ;;  %v1341_v45 = vld [vmem:[#allocation2 + $0x90] sm:$0xff] }
 0x4b1   :  { %v1242_v39 = vmax.f32 %v1241_v10, 0.0  ;;  %v1342_v10 = vld [vmem:[#allocation2 + $0x98] sm:$0xff] }
 0x4b3   :  { %1544 = vmatmul.mubr.msk.f32.vlgmr.msra.gmra.mxu1 %vm1247_vm13, %v1242_v39 }
 0x573   :  { %v1321_v0 = vpop.f32.mrf.mxu1 }
 0x574   :  { %v1322_v20 = vadd.f32 %v1508_v34, %v1321_v0 }
 0x575   :  { %v1545_v55 = vpop.f32.mrf.mxu1 }
 0x576   :  { %v1356_v58 = vrot.slane %v1322_v20, %v2327_v6  ;;  %v1391_v27 = vrot.slane %v1322_v20, %v1390_v11  ;;  %v1327_v6 = vld [vmem:[#allocation2 + $0x10] sm:$0xff]  ;;  %v1351_v11 = vld [vmem:[#allocation2 + $0xe0] sm:$0xff] }
 0x578   :  { %1362 = vbcast.lane.b32.xlu0 %v1356_v58, 264  ;;  %1358 = vbcast.lane.b32.xlu1 %v1356_v58, 256 }
 0x57c   :  { %1374 = vbcast.lane.b32.xlu0 %v1356_v58, 288  ;;  %1366 = vbcast.lane.b32.xlu1 %v1356_v58, 272 }
 0x580   :  { %1382 = vbcast.lane.b32.xlu0 %v1356_v58, 304  ;;  %1370 = vbcast.lane.b32.xlu1 %v1356_v58, 280 }
 0x584   :  { %1393 = vbcast.lane.b32.xlu0 %v1391_v27, 256  ;;  %1378 = vbcast.lane.b32.xlu1 %v1356_v58, 296 }
 0x588   :  { %1401 = vbcast.lane.b32.xlu0 %v1391_v27, 272  ;;  %1386 = vbcast.lane.b32.xlu1 %v1356_v58, 312 }
 0x58c   :  { %1409 = vbcast.lane.b32.xlu0 %v1391_v27, 288  ;;  %1397 = vbcast.lane.b32.xlu1 %v1391_v27, 264 }
 0x590   :  { %1417 = vbcast.lane.b32.xlu0 %v1391_v27, 304  ;;  %1405 = vbcast.lane.b32.xlu1 %v1391_v27, 280 }
 0x594   :  { %1413 = vbcast.lane.b32.xlu1 %v1391_v27, 296 }
 0x598   :  { %1421 = vbcast.lane.b32.xlu1 %v1391_v27, 312  ;;  %v1352_v27 = vld [vmem:[#allocation2 + $0xe8] sm:$0xff] }
 0x5ea   :  { %v1363_v50 = vpop.permute.xlu0 %1362  ;;  %v1359_v52 = vpop.permute.xlu1 %1358 }
 0x5eb   :  { %v1425_v37 = vadd.f32 %v1363_v50, %v1327_v6  ;;  %v1426_v2 = vadd.f32 %v1363_v50, %v1328_v14  ;;  %v1423_v46 = vadd.f32 %v1359_v52, %v1325_v59  ;;  %v1424_v22 = vadd.f32 %v1359_v52, %v1326_v53  ;;  %v1345_v6 = vld [vmem:[#allocation2 + $0xb0] sm:$0xff] }
 0x5ed   :  { %1457 = vst [vmem:[#allocation5 + $0x10] sm:$0xff] %v1425_v37  ;;  %1458 = vst [vmem:[#allocation5 + $0x18] sm:$0xff] %v1426_v2  ;;  %v1349_v37 = vld [vmem:[#allocation2 + $0xd0] sm:$0xff]  ;;  %v1350_v2 = vld [vmem:[#allocation2 + $0xd8] sm:$0xff] }
 0x5ee   :  { %1455 = vst [vmem:[#allocation5] sm:$0xff] %v1423_v46  ;;  %1456 = vst [vmem:[#allocation5 + $0x8] sm:$0xff] %v1424_v22  ;;  %v1375_v29 = vpop.permute.xlu0 %1374  ;;  %v1367_v35 = vpop.permute.xlu1 %1366 }
 0x5ef   :  { %v1431_v48 = vadd.f32 %v1375_v29, %v1333_v61  ;;  %v1432_v19 = vadd.f32 %v1375_v29, %v1334_v1  ;;  %v1427_v21 = vadd.f32 %v1367_v35, %v1329_v26  ;;  %v1428_v7 = vadd.f32 %v1367_v35, %v1330_v62 }
 0x5f1   :  { %1463 = vst [vmem:[#allocation5 + $0x40] sm:$0xff] %v1431_v48  ;;  %1464 = vst [vmem:[#allocation5 + $0x48] sm:$0xff] %v1432_v19 }
 0x5f2   :  { %1459 = vst [vmem:[#allocation5 + $0x20] sm:$0xff] %v1427_v21  ;;  %1460 = vst [vmem:[#allocation5 + $0x28] sm:$0xff] %v1428_v7  ;;  %v1383_v3 = vpop.permute.xlu0 %1382  ;;  %v1371_v38 = vpop.permute.xlu1 %1370 }
 0x5f3   :  { %v1435_v49 = vadd.f32 %v1383_v3, %v1337_v31  ;;  %v1436_v5 = vadd.f32 %v1383_v3, %v1338_v51  ;;  %v1429_v13 = vadd.f32 %v1371_v38, %v1331_v16  ;;  %v1430_v28 = vadd.f32 %v1371_v38, %v1332_v33 }
 0x5f5   :  { %1467 = vst [vmem:[#allocation5 + $0x60] sm:$0xff] %v1435_v49  ;;  %1468 = vst [vmem:[#allocation5 + $0x68] sm:$0xff] %v1436_v5 }
 0x5f6   :  { %1461 = vst [vmem:[#allocation5 + $0x30] sm:$0xff] %v1429_v13  ;;  %1462 = vst [vmem:[#allocation5 + $0x38] sm:$0xff] %v1430_v28  ;;  %v1394_v57 = vpop.permute.xlu0 %1393  ;;  %v1379_v44 = vpop.permute.xlu1 %1378 }
 0x5f7   :  { %v1439_v24 = vadd.f32 %v1394_v57, %v1339_v47  ;;  %v1440_v8 = vadd.f32 %v1394_v57, %v1340_v23  ;;  %v1433_v63 = vadd.f32 %v1379_v44, %v1335_v43  ;;  %v1434_v4 = vadd.f32 %v1379_v44, %v1336_v41 }
 0x5f9   :  { %1471 = vst [vmem:[#allocation5 + $0x80] sm:$0xff] %v1439_v24  ;;  %1472 = vst [vmem:[#allocation5 + $0x88] sm:$0xff] %v1440_v8 }
 0x5fa   :  { %1465 = vst [vmem:[#allocation5 + $0x50] sm:$0xff] %v1433_v63  ;;  %1466 = vst [vmem:[#allocation5 + $0x58] sm:$0xff] %v1434_v4  ;;  %v1402_v12 = vpop.permute.xlu0 %1401  ;;  %v1387_v18 = vpop.permute.xlu1 %1386 }
 0x5fb   :  { %v1443_v56 = vadd.f32 %v1402_v12, %v1343_v42  ;;  %v1444_v9 = vadd.f32 %v1402_v12, %v1344_v40  ;;  %v1437_v17 = vadd.f32 %v2392_v36, %v1387_v18  ;;  %v1438_v15 = vadd.f32 %v2395_v54, %v1387_v18  ;;  %v1346_v36 = vld [vmem:[#allocation2 + $0xb8] sm:$0xff] }
 0x5fd   :  { %1475 = vst [vmem:[#allocation5 + $0xa0] sm:$0xff] %v1443_v56  ;;  %1476 = vst [vmem:[#allocation5 + $0xa8] sm:$0xff] %v1444_v9 }
 0x5fe   :  { %1469 = vst [vmem:[#allocation5 + $0x70] sm:$0xff] %v1437_v17  ;;  %1470 = vst [vmem:[#allocation5 + $0x78] sm:$0xff] %v1438_v15  ;;  %v1410_v39 = vpop.permute.xlu0 %1409  ;;  %v1398_v34 = vpop.permute.xlu1 %1397 }
 0x5ff   :  { %v1447_v0 = vadd.f32 %v1410_v39, %v1347_v32  ;;  %v1448_v20 = vadd.f32 %v1410_v39, %v1348_v25  ;;  %v1441_v55 = vadd.f32 %v1398_v34, %v1341_v45  ;;  %v1442_v58 = vadd.f32 %v1398_v34, %v1342_v10 }
 0x601   :  { %1479 = vst [vmem:[#allocation5 + $0xc0] sm:$0xff] %v1447_v0  ;;  %1480 = vst [vmem:[#allocation5 + $0xc8] sm:$0xff] %v1448_v20 }
 0x602   :  { %1473 = vst [vmem:[#allocation5 + $0x90] sm:$0xff] %v1441_v55  ;;  %1474 = vst [vmem:[#allocation5 + $0x98] sm:$0xff] %v1442_v58  ;;  %v1418_v54 = vpop.permute.xlu0 %1417  ;;  %v1406_v14 = vpop.permute.xlu1 %1405 }
 0x603   :  { %v1451_v59 = vadd.f32 %v1418_v54, %v1351_v11  ;;  %v1452_v53 = vadd.f32 %v1418_v54, %v1352_v27  ;;  %v1445_v50 = vadd.f32 %v1406_v14, %v1345_v6  ;;  %v1446_v52 = vadd.f32 %v1406_v14, %v1346_v36 }
 0x605   :  { %1483 = vst [vmem:[#allocation5 + $0xe0] sm:$0xff] %v1451_v59  ;;  %1484 = vst [vmem:[#allocation5 + $0xe8] sm:$0xff] %v1452_v53 }
 0x606   :  { %1477 = vst [vmem:[#allocation5 + $0xb0] sm:$0xff] %v1445_v50  ;;  %1478 = vst [vmem:[#allocation5 + $0xb8] sm:$0xff] %v1446_v52  ;;  %v1414_v46 = vpop.permute.xlu1 %1413 }
 0x607   :  { %v1449_v22 = vadd.f32 %v1414_v46, %v1349_v37  ;;  %v1450_v61 = vadd.f32 %v1414_v46, %v1350_v2 }
 0x609   :  { %1481 = vst [vmem:[#allocation5 + $0xd0] sm:$0xff] %v1449_v22  ;;  %1482 = vst [vmem:[#allocation5 + $0xd8] sm:$0xff] %v1450_v61 }
 0x60a   :  { %v1422_v1 = vpop.permute.xlu1 %1421 }
 0x60b   :  { %v1453_v26 = vadd.f32 %v2399_v60, %v1422_v1  ;;  %v1454_v62 = vadd.f32 %v2402_v30, %v1422_v1 }
 0x60d   :  { %1485 = vst [vmem:[#allocation5 + $0xf0] sm:$0xff] %v1453_v26  ;;  %1486 = vst [vmem:[#allocation5 + $0xf8] sm:$0xff] %v1454_v62 }
 0x60e   :  { %1726 = shalt.err (!%p1723_p9)
}
 0x60f   :  { %1498 = dma.vmem_to_hbm [thread:$0]  %s1493_s3, 4096, %s2480_s4, [#allocation4], %s1740_s18, %s1740_s18, %s1741_s19  }
 0x610   :  { %1737 = dma.done.wait [#allocation4], 4096  }
 0x611   :  { %1738 = vsyncadd [#allocation4], 4294963200 }
 0x612   :  { %1502 = vsyncpa [#allocation3], 1 }
 0x613   :  { %1503 = vsyncpa [#allocation4], 1 }

</bundles_post_ra>
